<compile_context>
chip_gen: v6e
topology: v6e:2x2x1
jax: 0.10.0
libtpu: 0.0.40
codegen_flags: <defaults>
</compile_context>

<pallas_src>
import jax
import jax.numpy as jnp
from jax.experimental import pallas as pl
from jax.experimental.pallas import tpu as pltpu  # noqa: F401  (TPU backend)

# ----------------------------- config (small, ALBERT-like) -----------------------------
VOCAB = 100
EMB = 16           # embedding_size
HID = 32           # hidden_size
N_HEADS = 4
HEAD_DIM = HID // N_HEADS
INTER = 64         # intermediate_size
N_LAYERS = 2       # shared (ALBERT) layer applied N_LAYERS times
MAX_POS = 32
TYPE_VOCAB = 2
NUM_LABELS = 2
LN_EPS = 1e-12

B, S = 2, 8        # batch, sequence length


def _full_spec(shape):
    # single invocation (no grid): whole array as one VMEM block
    return pl.BlockSpec(shape, lambda *_: (0,) * len(shape))


# --------------------------- single fused forward kernel --------------------------------
def _albert_fused_kernel(
    emb_ref, bias_ref,
    emb_g_ref, emb_b_ref,
    map_w_ref, map_b_ref,
    wqkv_ref, bqkv_ref,
    wo_ref, bo_ref,
    attn_g_ref, attn_b_ref,
    w1_ref, b1_ref,
    w2_ref, b2_ref,
    ffn_g_ref, ffn_b_ref,
    pool_w_ref, pool_b_ref,
    cls_w_ref, cls_b_ref,
    o_ref,
):
    f32 = jnp.float32

    def ln(x, g, b):
        mu = jnp.mean(x, axis=-1, keepdims=True)
        var = jnp.mean(jnp.square(x - mu), axis=-1, keepdims=True)
        return (x - mu) * jax.lax.rsqrt(var + LN_EPS) * g + b

    def gelu_new(x):
        # HF "gelu_new": 0.5*x*(1+tanh(sqrt(2/pi)*(x+0.044715*x^3)))
        return 0.5 * x * (1.0 + jnp.tanh(0.7978845608028654 * (x + 0.044715 * x * x * x)))

    # ---- embeddings: LayerNorm + EMB -> HID projection (fused) ----
    x = ln(emb_ref[...], emb_g_ref[...], emb_b_ref[...])                          # [B*S, EMB]
    h = jnp.dot(x, map_w_ref[...], preferred_element_type=f32) + map_b_ref[...]   # [B*S, HID]

    # shared ALBERT layer weights: loaded once, stay resident across both layer iterations
    wqkv, bqkv = wqkv_ref[...], bqkv_ref[...]
    wo, bo = wo_ref[...], bo_ref[...]
    attn_g, attn_b = attn_g_ref[...], attn_b_ref[...]
    w1, b1 = w1_ref[...], b1_ref[...]
    w2, b2 = w2_ref[...], b2_ref[...]
    ffn_g, ffn_b = ffn_g_ref[...], ffn_b_ref[...]
    bias = bias_ref[...]                                                          # [B, S]

    scale = 1.0 / float(HEAD_DIM) ** 0.5
    qkt_dims = (((1,), (1,)), ((), ()))   # contract head_dim of q with head_dim of k

    for _ in range(N_LAYERS):             # shared layer, statically unrolled
        # fused Q|K|V projection: one MXU matmul instead of three
        qkv = jnp.dot(h, wqkv, preferred_element_type=f32) + bqkv                 # [B*S, 3*HID]

        # attention with heads handled in-kernel (no wrapper reshape/transpose);
        # ctx @ wo decomposed per head: sum_h ctx_h @ wo[h*dH:(h+1)*dH, :]
        attn_rows = []
        for b in range(B):
            r0 = b * S
            bias_b = bias[b:b + 1, :]                                             # [1, S]
            acc = None
            for hh in range(N_HEADS):
                c0 = hh * HEAD_DIM
                qb = qkv[r0:r0 + S, c0:c0 + HEAD_DIM]                             # [S, dH]
                kb = qkv[r0:r0 + S, HID + c0:HID + c0 + HEAD_DIM]
                vb = qkv[r0:r0 + S, 2 * HID + c0:2 * HID + c0 + HEAD_DIM]
                s = jax.lax.dot_general(qb, kb, qkt_dims,
                                        preferred_element_type=f32) * scale       # [S, S]
                s = s + bias_b
                m = jnp.max(s, axis=-1, keepdims=True)
                p = jnp.exp(s - m)
                p = p / jnp.sum(p, axis=-1, keepdims=True)
                ctx = jnp.dot(p, vb, preferred_element_type=f32)                  # [S, dH]
                contrib = jnp.dot(ctx, wo[c0:c0 + HEAD_DIM, :],
                                  preferred_element_type=f32)                     # [S, HID]
                acc = contrib if acc is None else acc + contrib
            attn_rows.append(acc)
        attn_out = jnp.concatenate(attn_rows, axis=0) + bo                        # [B*S, HID]
        h = ln(attn_out + h, attn_g, attn_b)

        # feed-forward (gelu_new), residual + LN fused in the same kernel
        ffn = gelu_new(jnp.dot(h, w1, preferred_element_type=f32) + b1)           # [B*S, INTER]
        ffn_out = jnp.dot(ffn, w2, preferred_element_type=f32) + b2
        h = ln(ffn_out + h, ffn_g, ffn_b)

    # ---- pooler(tanh) + classifier on CLS tokens (rows b*S), fused ----
    # CLS-row selection expressed as a tiny one-hot matmul (avoids unaligned gathers)
    col = jax.lax.broadcasted_iota(jnp.int32, (B, B * S), 1)
    row = jax.lax.broadcasted_iota(jnp.int32, (B, B * S), 0)
    sel = (col == row * S).astype(f32)                                            # [B, B*S]
    cls_tok = jnp.dot(sel, h, preferred_element_type=f32)                         # [B, HID]
    pooled = jnp.tanh(jnp.dot(cls_tok, pool_w_ref[...],
                              preferred_element_type=f32) + pool_b_ref[...])
    o_ref[...] = jnp.dot(pooled, cls_w_ref[...],
                         preferred_element_type=f32) + cls_b_ref[...]             # [B, LABELS]


# --------------------------------- parameters -------------------------------------------
def init_params(key):
    ks = iter(jax.random.split(key, 16))
    sd = 0.02

    def w(shape):
        return jax.random.normal(next(ks), shape, jnp.float32) * sd

    return {
        "word_emb": w((VOCAB, EMB)),
        "pos_emb": w((MAX_POS, EMB)),
        "type_emb": w((TYPE_VOCAB, EMB)),
        "emb_ln_g": jnp.ones((1, EMB), jnp.float32),
        "emb_ln_b": jnp.zeros((1, EMB), jnp.float32),
        "map_w": w((EMB, HID)), "map_b": jnp.zeros((1, HID), jnp.float32),
        # single shared (ALBERT) transformer layer; Q|K|V concatenated for one fused matmul
        "wqkv": w((HID, 3 * HID)), "bqkv": jnp.zeros((1, 3 * HID), jnp.float32),
        "wo": w((HID, HID)), "bo": jnp.zeros((1, HID), jnp.float32),
        "attn_ln_g": jnp.ones((1, HID), jnp.float32),
        "attn_ln_b": jnp.zeros((1, HID), jnp.float32),
        "ffn_w1": w((HID, INTER)), "ffn_b1": jnp.zeros((1, INTER), jnp.float32),
        "ffn_w2": w((INTER, HID)), "ffn_b2": jnp.zeros((1, HID), jnp.float32),
        "ffn_ln_g": jnp.ones((1, HID), jnp.float32),
        "ffn_ln_b": jnp.zeros((1, HID), jnp.float32),
        # pooler + classifier
        "pool_w": w((HID, HID)), "pool_b": jnp.zeros((1, HID), jnp.float32),
        "cls_w": w((HID, NUM_LABELS)), "cls_b": jnp.zeros((1, NUM_LABELS), jnp.float32),
    }


# --------------------------------- forward pass -----------------------------------------
def albert_logits(params, input_ids, attention_mask):
    # embedding gathers + sum are plain-JAX glue; everything else is ONE fused kernel
    tok = jnp.take(params["word_emb"], input_ids, axis=0)          # [B, S, E]
    pos = params["pos_emb"][:S][None, :, :]                        # [1, S, E]
    typ = params["type_emb"][0][None, None, :]                     # token_type_ids = 0
    emb = (tok + pos + typ).reshape(B * S, EMB)

    # additive mask bias precomputed once: 0 for attend, -1e9 for masked keys
    mask_bias = (attention_mask.astype(jnp.float32) - 1.0) * 1e9   # [B, S]

    args = (
        emb, mask_bias,
        params["emb_ln_g"], params["emb_ln_b"],
        params["map_w"], params["map_b"],
        params["wqkv"], params["bqkv"],
        params["wo"], params["bo"],
        params["attn_ln_g"], params["attn_ln_b"],
        params["ffn_w1"], params["ffn_b1"],
        params["ffn_w2"], params["ffn_b2"],
        params["ffn_ln_g"], params["ffn_ln_b"],
        params["pool_w"], params["pool_b"],
        params["cls_w"], params["cls_b"],
    )
    return pl.pallas_call(
        _albert_fused_kernel,
        out_shape=jax.ShapeDtypeStruct((B, NUM_LABELS), jnp.float32),
        in_specs=[_full_spec(a.shape) for a in args],
        out_specs=_full_spec((B, NUM_LABELS)),
    )(*args)


# TODO(synk): dropout layers are identity in eval mode and therefore omitted.

if __name__ == "__main__":
    key = jax.random.PRNGKey(0)
    pkey, ikey = jax.random.split(key)
    params = init_params(pkey)

    input_ids = jax.random.randint(ikey, (B, S), 0, VOCAB, dtype=jnp.int32)
    attention_mask = jnp.ones((B, S), jnp.int32).at[1, S - 2:].set(0)  # pad last 2 of batch 1

    logits = jax.jit(albert_logits)(params, input_ids, attention_mask)
    jax.block_until_ready(logits)
    assert logits.shape == (B, NUM_LABELS) and logits.dtype == jnp.float32
    print("KERNEL_OK")
</pallas_src>

<mosaic_0001>
module attributes {stable_mosaic.version = 11 : i64} {
  func.func @_albert_fused_kernel(%arg0: memref<16x16xf32, #tpu.memory_space<vmem>>, %arg1: memref<2x8xf32, #tpu.memory_space<vmem>>, %arg2: memref<1x16xf32, #tpu.memory_space<vmem>>, %arg3: memref<1x16xf32, #tpu.memory_space<vmem>>, %arg4: memref<16x32xf32, #tpu.memory_space<vmem>>, %arg5: memref<1x32xf32, #tpu.memory_space<vmem>>, %arg6: memref<32x96xf32, #tpu.memory_space<vmem>>, %arg7: memref<1x96xf32, #tpu.memory_space<vmem>>, %arg8: memref<32x32xf32, #tpu.memory_space<vmem>>, %arg9: memref<1x32xf32, #tpu.memory_space<vmem>>, %arg10: memref<1x32xf32, #tpu.memory_space<vmem>>, %arg11: memref<1x32xf32, #tpu.memory_space<vmem>>, %arg12: memref<32x64xf32, #tpu.memory_space<vmem>>, %arg13: memref<1x64xf32, #tpu.memory_space<vmem>>, %arg14: memref<64x32xf32, #tpu.memory_space<vmem>>, %arg15: memref<1x32xf32, #tpu.memory_space<vmem>>, %arg16: memref<1x32xf32, #tpu.memory_space<vmem>>, %arg17: memref<1x32xf32, #tpu.memory_space<vmem>>, %arg18: memref<32x32xf32, #tpu.memory_space<vmem>>, %arg19: memref<1x32xf32, #tpu.memory_space<vmem>>, %arg20: memref<32x2xf32, #tpu.memory_space<vmem>>, %arg21: memref<1x2xf32, #tpu.memory_space<vmem>>, %arg22: memref<2x2xf32, #tpu.memory_space<vmem>>) attributes {dimension_semantics = [], scalar_prefetch = 0 : i64, scratch_operands = 0 : i64, tpu.core_type = #tpu.core_type<tc>} {
    %c0 = arith.constant 0 : index
    %c0_0 = arith.constant 0 : index
    %0 = vector.load %arg0[%c0, %c0_0] : memref<16x16xf32, #tpu.memory_space<vmem>>, vector<16x16xf32>
    %c0_1 = arith.constant 0 : index
    %c0_2 = arith.constant 0 : index
    %1 = vector.load %arg2[%c0_1, %c0_2] : memref<1x16xf32, #tpu.memory_space<vmem>>, vector<1x16xf32>
    %c0_3 = arith.constant 0 : index
    %c0_4 = arith.constant 0 : index
    %2 = vector.load %arg3[%c0_3, %c0_4] : memref<1x16xf32, #tpu.memory_space<vmem>>, vector<1x16xf32>
    %cst = arith.constant dense<0.000000e+00> : vector<16xf32>
    %3 = vector.multi_reduction <add>, %0, %cst [1] : vector<16x16xf32> to vector<16xf32>
    %4 = vector.shape_cast %3 : vector<16xf32> to vector<16x1xf32>
    %cst_5 = arith.constant 1.600000e+01 : f32
    %5 = vector.broadcast %cst_5 : f32 to vector<16x1xf32>
    %6 = arith.divf %4, %5 : vector<16x1xf32>
    %7 = vector.broadcast %6 : vector<16x1xf32> to vector<16x16xf32>
    %8 = arith.subf %0, %7 : vector<16x16xf32>
    %9 = arith.mulf %8, %8 : vector<16x16xf32>
    %cst_6 = arith.constant dense<0.000000e+00> : vector<16xf32>
    %10 = vector.multi_reduction <add>, %9, %cst_6 [1] : vector<16x16xf32> to vector<16xf32>
    %11 = vector.shape_cast %10 : vector<16xf32> to vector<16x1xf32>
    %cst_7 = arith.constant 1.600000e+01 : f32
    %12 = vector.broadcast %cst_7 : f32 to vector<16x1xf32>
    %13 = arith.divf %11, %12 : vector<16x1xf32>
    %14 = vector.broadcast %6 : vector<16x1xf32> to vector<16x16xf32>
    %15 = arith.subf %0, %14 : vector<16x16xf32>
    %cst_8 = arith.constant 9.99999996E-13 : f32
    %16 = vector.broadcast %cst_8 : f32 to vector<16x1xf32>
    %17 = arith.addf %13, %16 : vector<16x1xf32>
    %18 = math.rsqrt %17 : vector<16x1xf32>
    %19 = vector.broadcast %18 : vector<16x1xf32> to vector<16x16xf32>
    %20 = arith.mulf %15, %19 : vector<16x16xf32>
    %21 = vector.broadcast %1 : vector<1x16xf32> to vector<16x16xf32>
    %22 = arith.mulf %20, %21 : vector<16x16xf32>
    %23 = vector.broadcast %2 : vector<1x16xf32> to vector<16x16xf32>
    %24 = arith.addf %22, %23 : vector<16x16xf32>
    %c0_9 = arith.constant 0 : index
    %c0_10 = arith.constant 0 : index
    %25 = vector.load %arg4[%c0_9, %c0_10] : memref<16x32xf32, #tpu.memory_space<vmem>>, vector<16x32xf32>
    %cst_11 = arith.constant dense<0.000000e+00> : vector<16x32xf32>
    %26 = tpu.matmul %24, %25, %cst_11 {dimension_numbers = #tpu.dot_dimension_numbers<[1], [0], [0], [1], [0, 0, 1, 1], [], []>} : vector<16x16xf32>, vector<16x32xf32>, vector<16x32xf32> -> vector<16x32xf32>
    %c0_12 = arith.constant 0 : index
    %c0_13 = arith.constant 0 : index
    %27 = vector.load %arg5[%c0_12, %c0_13] : memref<1x32xf32, #tpu.memory_space<vmem>>, vector<1x32xf32>
    %28 = vector.broadcast %27 : vector<1x32xf32> to vector<16x32xf32>
    %29 = arith.addf %26, %28 : vector<16x32xf32>
    %c0_14 = arith.constant 0 : index
    %c0_15 = arith.constant 0 : index
    %30 = vector.load %arg6[%c0_14, %c0_15] : memref<32x96xf32, #tpu.memory_space<vmem>>, vector<32x96xf32>
    %c0_16 = arith.constant 0 : index
    %c0_17 = arith.constant 0 : index
    %31 = vector.load %arg7[%c0_16, %c0_17] : memref<1x96xf32, #tpu.memory_space<vmem>>, vector<1x96xf32>
    %c0_18 = arith.constant 0 : index
    %c0_19 = arith.constant 0 : index
    %32 = vector.load %arg8[%c0_18, %c0_19] : memref<32x32xf32, #tpu.memory_space<vmem>>, vector<32x32xf32>
    %c0_20 = arith.constant 0 : index
    %c0_21 = arith.constant 0 : index
    %33 = vector.load %arg9[%c0_20, %c0_21] : memref<1x32xf32, #tpu.memory_space<vmem>>, vector<1x32xf32>
    %c0_22 = arith.constant 0 : index
    %c0_23 = arith.constant 0 : index
    %34 = vector.load %arg10[%c0_22, %c0_23] : memref<1x32xf32, #tpu.memory_space<vmem>>, vector<1x32xf32>
    %c0_24 = arith.constant 0 : index
    %c0_25 = arith.constant 0 : index
    %35 = vector.load %arg11[%c0_24, %c0_25] : memref<1x32xf32, #tpu.memory_space<vmem>>, vector<1x32xf32>
    %c0_26 = arith.constant 0 : index
    %c0_27 = arith.constant 0 : index
    %36 = vector.load %arg12[%c0_26, %c0_27] : memref<32x64xf32, #tpu.memory_space<vmem>>, vector<32x64xf32>
    %c0_28 = arith.constant 0 : index
    %c0_29 = arith.constant 0 : index
    %37 = vector.load %arg13[%c0_28, %c0_29] : memref<1x64xf32, #tpu.memory_space<vmem>>, vector<1x64xf32>
    %c0_30 = arith.constant 0 : index
    %c0_31 = arith.constant 0 : index
    %38 = vector.load %arg14[%c0_30, %c0_31] : memref<64x32xf32, #tpu.memory_space<vmem>>, vector<64x32xf32>
    %c0_32 = arith.constant 0 : index
    %c0_33 = arith.constant 0 : index
    %39 = vector.load %arg15[%c0_32, %c0_33] : memref<1x32xf32, #tpu.memory_space<vmem>>, vector<1x32xf32>
    %c0_34 = arith.constant 0 : index
    %c0_35 = arith.constant 0 : index
    %40 = vector.load %arg16[%c0_34, %c0_35] : memref<1x32xf32, #tpu.memory_space<vmem>>, vector<1x32xf32>
    %c0_36 = arith.constant 0 : index
    %c0_37 = arith.constant 0 : index
    %41 = vector.load %arg17[%c0_36, %c0_37] : memref<1x32xf32, #tpu.memory_space<vmem>>, vector<1x32xf32>
    %c0_38 = arith.constant 0 : index
    %c0_39 = arith.constant 0 : index
    %42 = vector.load %arg1[%c0_38, %c0_39] : memref<2x8xf32, #tpu.memory_space<vmem>>, vector<2x8xf32>
    %cst_40 = arith.constant dense<0.000000e+00> : vector<16x96xf32>
    %43 = tpu.matmul %29, %30, %cst_40 {dimension_numbers = #tpu.dot_dimension_numbers<[1], [0], [0], [1], [0, 0, 1, 1], [], []>} : vector<16x32xf32>, vector<32x96xf32>, vector<16x96xf32> -> vector<16x96xf32>
    %44 = vector.broadcast %31 : vector<1x96xf32> to vector<16x96xf32>
    %45 = arith.addf %43, %44 : vector<16x96xf32>
    %46 = vector.extract_strided_slice %42 {offsets = [0, 0], sizes = [1, 8], strides = [1, 1]} : vector<2x8xf32> to vector<1x8xf32>
    %47 = vector.extract_strided_slice %45 {offsets = [0, 0], sizes = [8, 8], strides = [1, 1]} : vector<16x96xf32> to vector<8x8xf32>
    %48 = vector.extract_strided_slice %45 {offsets = [0, 32], sizes = [8, 8], strides = [1, 1]} : vector<16x96xf32> to vector<8x8xf32>
    %49 = vector.extract_strided_slice %45 {offsets = [0, 64], sizes = [8, 8], strides = [1, 1]} : vector<16x96xf32> to vector<8x8xf32>
    %cst_41 = arith.constant dense<0.000000e+00> : vector<8x8xf32>
    %50 = tpu.matmul %47, %48, %cst_41 {dimension_numbers = #tpu.dot_dimension_numbers<[1], [1], [0], [0], [0, 0, 1, 0], [], []>} : vector<8x8xf32>, vector<8x8xf32>, vector<8x8xf32> -> vector<8x8xf32>
    %cst_42 = arith.constant 0.353553385 : f32
    %51 = vector.broadcast %cst_42 : f32 to vector<8x8xf32>
    %52 = arith.mulf %50, %51 : vector<8x8xf32>
    %53 = vector.broadcast %46 : vector<1x8xf32> to vector<8x8xf32>
    %54 = arith.addf %52, %53 : vector<8x8xf32>
    %cst_43 = arith.constant dense<0xFF800000> : vector<8xf32>
    %55 = vector.multi_reduction <maximumf>, %54, %cst_43 [1] : vector<8x8xf32> to vector<8xf32>
    %56 = vector.shape_cast %55 : vector<8xf32> to vector<8x1xf32>
    %57 = vector.broadcast %56 : vector<8x1xf32> to vector<8x8xf32>
    %58 = arith.subf %54, %57 : vector<8x8xf32>
    %59 = math.exp %58 : vector<8x8xf32>
    %cst_44 = arith.constant dense<0.000000e+00> : vector<8xf32>
    %60 = vector.multi_reduction <add>, %59, %cst_44 [1] : vector<8x8xf32> to vector<8xf32>
    %61 = vector.shape_cast %60 : vector<8xf32> to vector<8x1xf32>
    %62 = vector.broadcast %61 : vector<8x1xf32> to vector<8x8xf32>
    %63 = arith.divf %59, %62 : vector<8x8xf32>
    %cst_45 = arith.constant dense<0.000000e+00> : vector<8x8xf32>
    %64 = tpu.matmul %63, %49, %cst_45 {dimension_numbers = #tpu.dot_dimension_numbers<[1], [0], [0], [1], [0, 0, 1, 1], [], []>} : vector<8x8xf32>, vector<8x8xf32>, vector<8x8xf32> -> vector<8x8xf32>
    %65 = vector.extract_strided_slice %32 {offsets = [0, 0], sizes = [8, 32], strides = [1, 1]} : vector<32x32xf32> to vector<8x32xf32>
    %cst_46 = arith.constant dense<0.000000e+00> : vector<8x32xf32>
    %66 = tpu.matmul %64, %65, %cst_46 {dimension_numbers = #tpu.dot_dimension_numbers<[1], [0], [0], [1], [0, 0, 1, 1], [], []>} : vector<8x8xf32>, vector<8x32xf32>, vector<8x32xf32> -> vector<8x32xf32>
    %67 = vector.extract_strided_slice %45 {offsets = [0, 8], sizes = [8, 8], strides = [1, 1]} : vector<16x96xf32> to vector<8x8xf32>
    %68 = vector.extract_strided_slice %45 {offsets = [0, 40], sizes = [8, 8], strides = [1, 1]} : vector<16x96xf32> to vector<8x8xf32>
    %69 = vector.extract_strided_slice %45 {offsets = [0, 72], sizes = [8, 8], strides = [1, 1]} : vector<16x96xf32> to vector<8x8xf32>
    %cst_47 = arith.constant dense<0.000000e+00> : vector<8x8xf32>
    %70 = tpu.matmul %67, %68, %cst_47 {dimension_numbers = #tpu.dot_dimension_numbers<[1], [1], [0], [0], [0, 0, 1, 0], [], []>} : vector<8x8xf32>, vector<8x8xf32>, vector<8x8xf32> -> vector<8x8xf32>
    %cst_48 = arith.constant 0.353553385 : f32
    %71 = vector.broadcast %cst_48 : f32 to vector<8x8xf32>
    %72 = arith.mulf %70, %71 : vector<8x8xf32>
    %73 = vector.broadcast %46 : vector<1x8xf32> to vector<8x8xf32>
    %74 = arith.addf %72, %73 : vector<8x8xf32>
    %cst_49 = arith.constant dense<0xFF800000> : vector<8xf32>
    %75 = vector.multi_reduction <maximumf>, %74, %cst_49 [1] : vector<8x8xf32> to vector<8xf32>
    %76 = vector.shape_cast %75 : vector<8xf32> to vector<8x1xf32>
    %77 = vector.broadcast %76 : vector<8x1xf32> to vector<8x8xf32>
    %78 = arith.subf %74, %77 : vector<8x8xf32>
    %79 = math.exp %78 : vector<8x8xf32>
    %cst_50 = arith.constant dense<0.000000e+00> : vector<8xf32>
    %80 = vector.multi_reduction <add>, %79, %cst_50 [1] : vector<8x8xf32> to vector<8xf32>
    %81 = vector.shape_cast %80 : vector<8xf32> to vector<8x1xf32>
    %82 = vector.broadcast %81 : vector<8x1xf32> to vector<8x8xf32>
    %83 = arith.divf %79, %82 : vector<8x8xf32>
    %cst_51 = arith.constant dense<0.000000e+00> : vector<8x8xf32>
    %84 = tpu.matmul %83, %69, %cst_51 {dimension_numbers = #tpu.dot_dimension_numbers<[1], [0], [0], [1], [0, 0, 1, 1], [], []>} : vector<8x8xf32>, vector<8x8xf32>, vector<8x8xf32> -> vector<8x8xf32>
    %85 = vector.extract_strided_slice %32 {offsets = [8, 0], sizes = [8, 32], strides = [1, 1]} : vector<32x32xf32> to vector<8x32xf32>
    %cst_52 = arith.constant dense<0.000000e+00> : vector<8x32xf32>
    %86 = tpu.matmul %84, %85, %cst_52 {dimension_numbers = #tpu.dot_dimension_numbers<[1], [0], [0], [1], [0, 0, 1, 1], [], []>} : vector<8x8xf32>, vector<8x32xf32>, vector<8x32xf32> -> vector<8x32xf32>
    %87 = arith.addf %66, %86 : vector<8x32xf32>
    %88 = vector.extract_strided_slice %45 {offsets = [0, 16], sizes = [8, 8], strides = [1, 1]} : vector<16x96xf32> to vector<8x8xf32>
    %89 = vector.extract_strided_slice %45 {offsets = [0, 48], sizes = [8, 8], strides = [1, 1]} : vector<16x96xf32> to vector<8x8xf32>
    %90 = vector.extract_strided_slice %45 {offsets = [0, 80], sizes = [8, 8], strides = [1, 1]} : vector<16x96xf32> to vector<8x8xf32>
    %cst_53 = arith.constant dense<0.000000e+00> : vector<8x8xf32>
    %91 = tpu.matmul %88, %89, %cst_53 {dimension_numbers = #tpu.dot_dimension_numbers<[1], [1], [0], [0], [0, 0, 1, 0], [], []>} : vector<8x8xf32>, vector<8x8xf32>, vector<8x8xf32> -> vector<8x8xf32>
    %cst_54 = arith.constant 0.353553385 : f32
    %92 = vector.broadcast %cst_54 : f32 to vector<8x8xf32>
    %93 = arith.mulf %91, %92 : vector<8x8xf32>
    %94 = vector.broadcast %46 : vector<1x8xf32> to vector<8x8xf32>
    %95 = arith.addf %93, %94 : vector<8x8xf32>
    %cst_55 = arith.constant dense<0xFF800000> : vector<8xf32>
    %96 = vector.multi_reduction <maximumf>, %95, %cst_55 [1] : vector<8x8xf32> to vector<8xf32>
    %97 = vector.shape_cast %96 : vector<8xf32> to vector<8x1xf32>
    %98 = vector.broadcast %97 : vector<8x1xf32> to vector<8x8xf32>
    %99 = arith.subf %95, %98 : vector<8x8xf32>
    %100 = math.exp %99 : vector<8x8xf32>
    %cst_56 = arith.constant dense<0.000000e+00> : vector<8xf32>
    %101 = vector.multi_reduction <add>, %100, %cst_56 [1] : vector<8x8xf32> to vector<8xf32>
    %102 = vector.shape_cast %101 : vector<8xf32> to vector<8x1xf32>
    %103 = vector.broadcast %102 : vector<8x1xf32> to vector<8x8xf32>
    %104 = arith.divf %100, %103 : vector<8x8xf32>
    %cst_57 = arith.constant dense<0.000000e+00> : vector<8x8xf32>
    %105 = tpu.matmul %104, %90, %cst_57 {dimension_numbers = #tpu.dot_dimension_numbers<[1], [0], [0], [1], [0, 0, 1, 1], [], []>} : vector<8x8xf32>, vector<8x8xf32>, vector<8x8xf32> -> vector<8x8xf32>
    %106 = vector.extract_strided_slice %32 {offsets = [16, 0], sizes = [8, 32], strides = [1, 1]} : vector<32x32xf32> to vector<8x32xf32>
    %cst_58 = arith.constant dense<0.000000e+00> : vector<8x32xf32>
    %107 = tpu.matmul %105, %106, %cst_58 {dimension_numbers = #tpu.dot_dimension_numbers<[1], [0], [0], [1], [0, 0, 1, 1], [], []>} : vector<8x8xf32>, vector<8x32xf32>, vector<8x32xf32> -> vector<8x32xf32>
    %108 = arith.addf %87, %107 : vector<8x32xf32>
    %109 = vector.extract_strided_slice %45 {offsets = [0, 24], sizes = [8, 8], strides = [1, 1]} : vector<16x96xf32> to vector<8x8xf32>
    %110 = vector.extract_strided_slice %45 {offsets = [0, 56], sizes = [8, 8], strides = [1, 1]} : vector<16x96xf32> to vector<8x8xf32>
    %111 = vector.extract_strided_slice %45 {offsets = [0, 88], sizes = [8, 8], strides = [1, 1]} : vector<16x96xf32> to vector<8x8xf32>
    %cst_59 = arith.constant dense<0.000000e+00> : vector<8x8xf32>
    %112 = tpu.matmul %109, %110, %cst_59 {dimension_numbers = #tpu.dot_dimension_numbers<[1], [1], [0], [0], [0, 0, 1, 0], [], []>} : vector<8x8xf32>, vector<8x8xf32>, vector<8x8xf32> -> vector<8x8xf32>
    %cst_60 = arith.constant 0.353553385 : f32
    %113 = vector.broadcast %cst_60 : f32 to vector<8x8xf32>
    %114 = arith.mulf %112, %113 : vector<8x8xf32>
    %115 = vector.broadcast %46 : vector<1x8xf32> to vector<8x8xf32>
    %116 = arith.addf %114, %115 : vector<8x8xf32>
    %cst_61 = arith.constant dense<0xFF800000> : vector<8xf32>
    %117 = vector.multi_reduction <maximumf>, %116, %cst_61 [1] : vector<8x8xf32> to vector<8xf32>
    %118 = vector.shape_cast %117 : vector<8xf32> to vector<8x1xf32>
    %119 = vector.broadcast %118 : vector<8x1xf32> to vector<8x8xf32>
    %120 = arith.subf %116, %119 : vector<8x8xf32>
    %121 = math.exp %120 : vector<8x8xf32>
    %cst_62 = arith.constant dense<0.000000e+00> : vector<8xf32>
    %122 = vector.multi_reduction <add>, %121, %cst_62 [1] : vector<8x8xf32> to vector<8xf32>
    %123 = vector.shape_cast %122 : vector<8xf32> to vector<8x1xf32>
    %124 = vector.broadcast %123 : vector<8x1xf32> to vector<8x8xf32>
    %125 = arith.divf %121, %124 : vector<8x8xf32>
    %cst_63 = arith.constant dense<0.000000e+00> : vector<8x8xf32>
    %126 = tpu.matmul %125, %111, %cst_63 {dimension_numbers = #tpu.dot_dimension_numbers<[1], [0], [0], [1], [0, 0, 1, 1], [], []>} : vector<8x8xf32>, vector<8x8xf32>, vector<8x8xf32> -> vector<8x8xf32>
    %127 = vector.extract_strided_slice %32 {offsets = [24, 0], sizes = [8, 32], strides = [1, 1]} : vector<32x32xf32> to vector<8x32xf32>
    %cst_64 = arith.constant dense<0.000000e+00> : vector<8x32xf32>
    %128 = tpu.matmul %126, %127, %cst_64 {dimension_numbers = #tpu.dot_dimension_numbers<[1], [0], [0], [1], [0, 0, 1, 1], [], []>} : vector<8x8xf32>, vector<8x32xf32>, vector<8x32xf32> -> vector<8x32xf32>
    %129 = arith.addf %108, %128 : vector<8x32xf32>
    %130 = vector.extract_strided_slice %42 {offsets = [1, 0], sizes = [1, 8], strides = [1, 1]} : vector<2x8xf32> to vector<1x8xf32>
    %131 = vector.extract_strided_slice %45 {offsets = [8, 0], sizes = [8, 8], strides = [1, 1]} : vector<16x96xf32> to vector<8x8xf32>
    %132 = vector.extract_strided_slice %45 {offsets = [8, 32], sizes = [8, 8], strides = [1, 1]} : vector<16x96xf32> to vector<8x8xf32>
    %133 = vector.extract_strided_slice %45 {offsets = [8, 64], sizes = [8, 8], strides = [1, 1]} : vector<16x96xf32> to vector<8x8xf32>
    %cst_65 = arith.constant dense<0.000000e+00> : vector<8x8xf32>
    %134 = tpu.matmul %131, %132, %cst_65 {dimension_numbers = #tpu.dot_dimension_numbers<[1], [1], [0], [0], [0, 0, 1, 0], [], []>} : vector<8x8xf32>, vector<8x8xf32>, vector<8x8xf32> -> vector<8x8xf32>
    %cst_66 = arith.constant 0.353553385 : f32
    %135 = vector.broadcast %cst_66 : f32 to vector<8x8xf32>
    %136 = arith.mulf %134, %135 : vector<8x8xf32>
    %137 = vector.broadcast %130 : vector<1x8xf32> to vector<8x8xf32>
    %138 = arith.addf %136, %137 : vector<8x8xf32>
    %cst_67 = arith.constant dense<0xFF800000> : vector<8xf32>
    %139 = vector.multi_reduction <maximumf>, %138, %cst_67 [1] : vector<8x8xf32> to vector<8xf32>
    %140 = vector.shape_cast %139 : vector<8xf32> to vector<8x1xf32>
    %141 = vector.broadcast %140 : vector<8x1xf32> to vector<8x8xf32>
    %142 = arith.subf %138, %141 : vector<8x8xf32>
    %143 = math.exp %142 : vector<8x8xf32>
    %cst_68 = arith.constant dense<0.000000e+00> : vector<8xf32>
    %144 = vector.multi_reduction <add>, %143, %cst_68 [1] : vector<8x8xf32> to vector<8xf32>
    %145 = vector.shape_cast %144 : vector<8xf32> to vector<8x1xf32>
    %146 = vector.broadcast %145 : vector<8x1xf32> to vector<8x8xf32>
    %147 = arith.divf %143, %146 : vector<8x8xf32>
    %cst_69 = arith.constant dense<0.000000e+00> : vector<8x8xf32>
    %148 = tpu.matmul %147, %133, %cst_69 {dimension_numbers = #tpu.dot_dimension_numbers<[1], [0], [0], [1], [0, 0, 1, 1], [], []>} : vector<8x8xf32>, vector<8x8xf32>, vector<8x8xf32> -> vector<8x8xf32>
    %149 = vector.extract_strided_slice %32 {offsets = [0, 0], sizes = [8, 32], strides = [1, 1]} : vector<32x32xf32> to vector<8x32xf32>
    %cst_70 = arith.constant dense<0.000000e+00> : vector<8x32xf32>
    %150 = tpu.matmul %148, %149, %cst_70 {dimension_numbers = #tpu.dot_dimension_numbers<[1], [0], [0], [1], [0, 0, 1, 1], [], []>} : vector<8x8xf32>, vector<8x32xf32>, vector<8x32xf32> -> vector<8x32xf32>
    %151 = vector.extract_strided_slice %45 {offsets = [8, 8], sizes = [8, 8], strides = [1, 1]} : vector<16x96xf32> to vector<8x8xf32>
    %152 = vector.extract_strided_slice %45 {offsets = [8, 40], sizes = [8, 8], strides = [1, 1]} : vector<16x96xf32> to vector<8x8xf32>
    %153 = vector.extract_strided_slice %45 {offsets = [8, 72], sizes = [8, 8], strides = [1, 1]} : vector<16x96xf32> to vector<8x8xf32>
    %cst_71 = arith.constant dense<0.000000e+00> : vector<8x8xf32>
    %154 = tpu.matmul %151, %152, %cst_71 {dimension_numbers = #tpu.dot_dimension_numbers<[1], [1], [0], [0], [0, 0, 1, 0], [], []>} : vector<8x8xf32>, vector<8x8xf32>, vector<8x8xf32> -> vector<8x8xf32>
    %cst_72 = arith.constant 0.353553385 : f32
    %155 = vector.broadcast %cst_72 : f32 to vector<8x8xf32>
    %156 = arith.mulf %154, %155 : vector<8x8xf32>
    %157 = vector.broadcast %130 : vector<1x8xf32> to vector<8x8xf32>
    %158 = arith.addf %156, %157 : vector<8x8xf32>
    %cst_73 = arith.constant dense<0xFF800000> : vector<8xf32>
    %159 = vector.multi_reduction <maximumf>, %158, %cst_73 [1] : vector<8x8xf32> to vector<8xf32>
    %160 = vector.shape_cast %159 : vector<8xf32> to vector<8x1xf32>
    %161 = vector.broadcast %160 : vector<8x1xf32> to vector<8x8xf32>
    %162 = arith.subf %158, %161 : vector<8x8xf32>
    %163 = math.exp %162 : vector<8x8xf32>
    %cst_74 = arith.constant dense<0.000000e+00> : vector<8xf32>
    %164 = vector.multi_reduction <add>, %163, %cst_74 [1] : vector<8x8xf32> to vector<8xf32>
    %165 = vector.shape_cast %164 : vector<8xf32> to vector<8x1xf32>
    %166 = vector.broadcast %165 : vector<8x1xf32> to vector<8x8xf32>
    %167 = arith.divf %163, %166 : vector<8x8xf32>
    %cst_75 = arith.constant dense<0.000000e+00> : vector<8x8xf32>
    %168 = tpu.matmul %167, %153, %cst_75 {dimension_numbers = #tpu.dot_dimension_numbers<[1], [0], [0], [1], [0, 0, 1, 1], [], []>} : vector<8x8xf32>, vector<8x8xf32>, vector<8x8xf32> -> vector<8x8xf32>
    %169 = vector.extract_strided_slice %32 {offsets = [8, 0], sizes = [8, 32], strides = [1, 1]} : vector<32x32xf32> to vector<8x32xf32>
    %cst_76 = arith.constant dense<0.000000e+00> : vector<8x32xf32>
    %170 = tpu.matmul %168, %169, %cst_76 {dimension_numbers = #tpu.dot_dimension_numbers<[1], [0], [0], [1], [0, 0, 1, 1], [], []>} : vector<8x8xf32>, vector<8x32xf32>, vector<8x32xf32> -> vector<8x32xf32>
    %171 = arith.addf %150, %170 : vector<8x32xf32>
    %172 = vector.extract_strided_slice %45 {offsets = [8, 16], sizes = [8, 8], strides = [1, 1]} : vector<16x96xf32> to vector<8x8xf32>
    %173 = vector.extract_strided_slice %45 {offsets = [8, 48], sizes = [8, 8], strides = [1, 1]} : vector<16x96xf32> to vector<8x8xf32>
    %174 = vector.extract_strided_slice %45 {offsets = [8, 80], sizes = [8, 8], strides = [1, 1]} : vector<16x96xf32> to vector<8x8xf32>
    %cst_77 = arith.constant dense<0.000000e+00> : vector<8x8xf32>
    %175 = tpu.matmul %172, %173, %cst_77 {dimension_numbers = #tpu.dot_dimension_numbers<[1], [1], [0], [0], [0, 0, 1, 0], [], []>} : vector<8x8xf32>, vector<8x8xf32>, vector<8x8xf32> -> vector<8x8xf32>
    %cst_78 = arith.constant 0.353553385 : f32
    %176 = vector.broadcast %cst_78 : f32 to vector<8x8xf32>
    %177 = arith.mulf %175, %176 : vector<8x8xf32>
    %178 = vector.broadcast %130 : vector<1x8xf32> to vector<8x8xf32>
    %179 = arith.addf %177, %178 : vector<8x8xf32>
    %cst_79 = arith.constant dense<0xFF800000> : vector<8xf32>
    %180 = vector.multi_reduction <maximumf>, %179, %cst_79 [1] : vector<8x8xf32> to vector<8xf32>
    %181 = vector.shape_cast %180 : vector<8xf32> to vector<8x1xf32>
    %182 = vector.broadcast %181 : vector<8x1xf32> to vector<8x8xf32>
    %183 = arith.subf %179, %182 : vector<8x8xf32>
    %184 = math.exp %183 : vector<8x8xf32>
    %cst_80 = arith.constant dense<0.000000e+00> : vector<8xf32>
    %185 = vector.multi_reduction <add>, %184, %cst_80 [1] : vector<8x8xf32> to vector<8xf32>
    %186 = vector.shape_cast %185 : vector<8xf32> to vector<8x1xf32>
    %187 = vector.broadcast %186 : vector<8x1xf32> to vector<8x8xf32>
    %188 = arith.divf %184, %187 : vector<8x8xf32>
    %cst_81 = arith.constant dense<0.000000e+00> : vector<8x8xf32>
    %189 = tpu.matmul %188, %174, %cst_81 {dimension_numbers = #tpu.dot_dimension_numbers<[1], [0], [0], [1], [0, 0, 1, 1], [], []>} : vector<8x8xf32>, vector<8x8xf32>, vector<8x8xf32> -> vector<8x8xf32>
    %190 = vector.extract_strided_slice %32 {offsets = [16, 0], sizes = [8, 32], strides = [1, 1]} : vector<32x32xf32> to vector<8x32xf32>
    %cst_82 = arith.constant dense<0.000000e+00> : vector<8x32xf32>
    %191 = tpu.matmul %189, %190, %cst_82 {dimension_numbers = #tpu.dot_dimension_numbers<[1], [0], [0], [1], [0, 0, 1, 1], [], []>} : vector<8x8xf32>, vector<8x32xf32>, vector<8x32xf32> -> vector<8x32xf32>
    %192 = arith.addf %171, %191 : vector<8x32xf32>
    %193 = vector.extract_strided_slice %45 {offsets = [8, 24], sizes = [8, 8], strides = [1, 1]} : vector<16x96xf32> to vector<8x8xf32>
    %194 = vector.extract_strided_slice %45 {offsets = [8, 56], sizes = [8, 8], strides = [1, 1]} : vector<16x96xf32> to vector<8x8xf32>
    %195 = vector.extract_strided_slice %45 {offsets = [8, 88], sizes = [8, 8], strides = [1, 1]} : vector<16x96xf32> to vector<8x8xf32>
    %cst_83 = arith.constant dense<0.000000e+00> : vector<8x8xf32>
    %196 = tpu.matmul %193, %194, %cst_83 {dimension_numbers = #tpu.dot_dimension_numbers<[1], [1], [0], [0], [0, 0, 1, 0], [], []>} : vector<8x8xf32>, vector<8x8xf32>, vector<8x8xf32> -> vector<8x8xf32>
    %cst_84 = arith.constant 0.353553385 : f32
    %197 = vector.broadcast %cst_84 : f32 to vector<8x8xf32>
    %198 = arith.mulf %196, %197 : vector<8x8xf32>
    %199 = vector.broadcast %130 : vector<1x8xf32> to vector<8x8xf32>
    %200 = arith.addf %198, %199 : vector<8x8xf32>
    %cst_85 = arith.constant dense<0xFF800000> : vector<8xf32>
    %201 = vector.multi_reduction <maximumf>, %200, %cst_85 [1] : vector<8x8xf32> to vector<8xf32>
    %202 = vector.shape_cast %201 : vector<8xf32> to vector<8x1xf32>
    %203 = vector.broadcast %202 : vector<8x1xf32> to vector<8x8xf32>
    %204 = arith.subf %200, %203 : vector<8x8xf32>
    %205 = math.exp %204 : vector<8x8xf32>
    %cst_86 = arith.constant dense<0.000000e+00> : vector<8xf32>
    %206 = vector.multi_reduction <add>, %205, %cst_86 [1] : vector<8x8xf32> to vector<8xf32>
    %207 = vector.shape_cast %206 : vector<8xf32> to vector<8x1xf32>
    %208 = vector.broadcast %207 : vector<8x1xf32> to vector<8x8xf32>
    %209 = arith.divf %205, %208 : vector<8x8xf32>
    %cst_87 = arith.constant dense<0.000000e+00> : vector<8x8xf32>
    %210 = tpu.matmul %209, %195, %cst_87 {dimension_numbers = #tpu.dot_dimension_numbers<[1], [0], [0], [1], [0, 0, 1, 1], [], []>} : vector<8x8xf32>, vector<8x8xf32>, vector<8x8xf32> -> vector<8x8xf32>
    %211 = vector.extract_strided_slice %32 {offsets = [24, 0], sizes = [8, 32], strides = [1, 1]} : vector<32x32xf32> to vector<8x32xf32>
    %cst_88 = arith.constant dense<0.000000e+00> : vector<8x32xf32>
    %212 = tpu.matmul %210, %211, %cst_88 {dimension_numbers = #tpu.dot_dimension_numbers<[1], [0], [0], [1], [0, 0, 1, 1], [], []>} : vector<8x8xf32>, vector<8x32xf32>, vector<8x32xf32> -> vector<8x32xf32>
    %213 = arith.addf %192, %212 : vector<8x32xf32>
    %214 = tpu.concatenate %129, %213 in 0 : vector<8x32xf32>, vector<8x32xf32> -> vector<16x32xf32>
    %215 = vector.broadcast %33 : vector<1x32xf32> to vector<16x32xf32>
    %216 = arith.addf %214, %215 : vector<16x32xf32>
    %217 = arith.addf %216, %29 : vector<16x32xf32>
    %cst_89 = arith.constant dense<0.000000e+00> : vector<16xf32>
    %218 = vector.multi_reduction <add>, %217, %cst_89 [1] : vector<16x32xf32> to vector<16xf32>
    %219 = vector.shape_cast %218 : vector<16xf32> to vector<16x1xf32>
    %cst_90 = arith.constant 3.200000e+01 : f32
    %220 = vector.broadcast %cst_90 : f32 to vector<16x1xf32>
    %221 = arith.divf %219, %220 : vector<16x1xf32>
    %222 = vector.broadcast %221 : vector<16x1xf32> to vector<16x32xf32>
    %223 = arith.subf %217, %222 : vector<16x32xf32>
    %224 = arith.mulf %223, %223 : vector<16x32xf32>
    %cst_91 = arith.constant dense<0.000000e+00> : vector<16xf32>
    %225 = vector.multi_reduction <add>, %224, %cst_91 [1] : vector<16x32xf32> to vector<16xf32>
    %226 = vector.shape_cast %225 : vector<16xf32> to vector<16x1xf32>
    %cst_92 = arith.constant 3.200000e+01 : f32
    %227 = vector.broadcast %cst_92 : f32 to vector<16x1xf32>
    %228 = arith.divf %226, %227 : vector<16x1xf32>
    %229 = vector.broadcast %221 : vector<16x1xf32> to vector<16x32xf32>
    %230 = arith.subf %217, %229 : vector<16x32xf32>
    %cst_93 = arith.constant 9.99999996E-13 : f32
    %231 = vector.broadcast %cst_93 : f32 to vector<16x1xf32>
    %232 = arith.addf %228, %231 : vector<16x1xf32>
    %233 = math.rsqrt %232 : vector<16x1xf32>
    %234 = vector.broadcast %233 : vector<16x1xf32> to vector<16x32xf32>
    %235 = arith.mulf %230, %234 : vector<16x32xf32>
    %236 = vector.broadcast %34 : vector<1x32xf32> to vector<16x32xf32>
    %237 = arith.mulf %235, %236 : vector<16x32xf32>
    %238 = vector.broadcast %35 : vector<1x32xf32> to vector<16x32xf32>
    %239 = arith.addf %237, %238 : vector<16x32xf32>
    %cst_94 = arith.constant dense<0.000000e+00> : vector<16x64xf32>
    %240 = tpu.matmul %239, %36, %cst_94 {dimension_numbers = #tpu.dot_dimension_numbers<[1], [0], [0], [1], [0, 0, 1, 1], [], []>} : vector<16x32xf32>, vector<32x64xf32>, vector<16x64xf32> -> vector<16x64xf32>
    %241 = vector.broadcast %37 : vector<1x64xf32> to vector<16x64xf32>
    %242 = arith.addf %240, %241 : vector<16x64xf32>
    %cst_95 = arith.constant 5.000000e-01 : f32
    %243 = vector.broadcast %cst_95 : f32 to vector<16x64xf32>
    %244 = arith.mulf %243, %242 : vector<16x64xf32>
    %cst_96 = arith.constant 4.471500e-02 : f32
    %245 = vector.broadcast %cst_96 : f32 to vector<16x64xf32>
    %246 = arith.mulf %245, %242 : vector<16x64xf32>
    %247 = arith.mulf %246, %242 : vector<16x64xf32>
    %248 = arith.mulf %247, %242 : vector<16x64xf32>
    %249 = arith.addf %242, %248 : vector<16x64xf32>
    %cst_97 = arith.constant 0.797884583 : f32
    %250 = vector.broadcast %cst_97 : f32 to vector<16x64xf32>
    %251 = arith.mulf %250, %249 : vector<16x64xf32>
    %252 = math.tanh %251 : vector<16x64xf32>
    %cst_98 = arith.constant 1.000000e+00 : f32
    %253 = vector.broadcast %cst_98 : f32 to vector<16x64xf32>
    %254 = arith.addf %253, %252 : vector<16x64xf32>
    %255 = arith.mulf %244, %254 : vector<16x64xf32>
    %cst_99 = arith.constant dense<0.000000e+00> : vector<16x32xf32>
    %256 = tpu.matmul %255, %38, %cst_99 {dimension_numbers = #tpu.dot_dimension_numbers<[1], [0], [0], [1], [0, 0, 1, 1], [], []>} : vector<16x64xf32>, vector<64x32xf32>, vector<16x32xf32> -> vector<16x32xf32>
    %257 = vector.broadcast %39 : vector<1x32xf32> to vector<16x32xf32>
    %258 = arith.addf %256, %257 : vector<16x32xf32>
    %259 = arith.addf %258, %239 : vector<16x32xf32>
    %cst_100 = arith.constant dense<0.000000e+00> : vector<16xf32>
    %260 = vector.multi_reduction <add>, %259, %cst_100 [1] : vector<16x32xf32> to vector<16xf32>
    %261 = vector.shape_cast %260 : vector<16xf32> to vector<16x1xf32>
    %cst_101 = arith.constant 3.200000e+01 : f32
    %262 = vector.broadcast %cst_101 : f32 to vector<16x1xf32>
    %263 = arith.divf %261, %262 : vector<16x1xf32>
    %264 = vector.broadcast %263 : vector<16x1xf32> to vector<16x32xf32>
    %265 = arith.subf %259, %264 : vector<16x32xf32>
    %266 = arith.mulf %265, %265 : vector<16x32xf32>
    %cst_102 = arith.constant dense<0.000000e+00> : vector<16xf32>
    %267 = vector.multi_reduction <add>, %266, %cst_102 [1] : vector<16x32xf32> to vector<16xf32>
    %268 = vector.shape_cast %267 : vector<16xf32> to vector<16x1xf32>
    %cst_103 = arith.constant 3.200000e+01 : f32
    %269 = vector.broadcast %cst_103 : f32 to vector<16x1xf32>
    %270 = arith.divf %268, %269 : vector<16x1xf32>
    %271 = vector.broadcast %263 : vector<16x1xf32> to vector<16x32xf32>
    %272 = arith.subf %259, %271 : vector<16x32xf32>
    %cst_104 = arith.constant 9.99999996E-13 : f32
    %273 = vector.broadcast %cst_104 : f32 to vector<16x1xf32>
    %274 = arith.addf %270, %273 : vector<16x1xf32>
    %275 = math.rsqrt %274 : vector<16x1xf32>
    %276 = vector.broadcast %275 : vector<16x1xf32> to vector<16x32xf32>
    %277 = arith.mulf %272, %276 : vector<16x32xf32>
    %278 = vector.broadcast %40 : vector<1x32xf32> to vector<16x32xf32>
    %279 = arith.mulf %277, %278 : vector<16x32xf32>
    %280 = vector.broadcast %41 : vector<1x32xf32> to vector<16x32xf32>
    %281 = arith.addf %279, %280 : vector<16x32xf32>
    %cst_105 = arith.constant dense<0.000000e+00> : vector<16x96xf32>
    %282 = tpu.matmul %281, %30, %cst_105 {dimension_numbers = #tpu.dot_dimension_numbers<[1], [0], [0], [1], [0, 0, 1, 1], [], []>} : vector<16x32xf32>, vector<32x96xf32>, vector<16x96xf32> -> vector<16x96xf32>
    %283 = vector.broadcast %31 : vector<1x96xf32> to vector<16x96xf32>
    %284 = arith.addf %282, %283 : vector<16x96xf32>
    %285 = vector.extract_strided_slice %42 {offsets = [0, 0], sizes = [1, 8], strides = [1, 1]} : vector<2x8xf32> to vector<1x8xf32>
    %286 = vector.extract_strided_slice %284 {offsets = [0, 0], sizes = [8, 8], strides = [1, 1]} : vector<16x96xf32> to vector<8x8xf32>
    %287 = vector.extract_strided_slice %284 {offsets = [0, 32], sizes = [8, 8], strides = [1, 1]} : vector<16x96xf32> to vector<8x8xf32>
    %288 = vector.extract_strided_slice %284 {offsets = [0, 64], sizes = [8, 8], strides = [1, 1]} : vector<16x96xf32> to vector<8x8xf32>
    %cst_106 = arith.constant dense<0.000000e+00> : vector<8x8xf32>
    %289 = tpu.matmul %286, %287, %cst_106 {dimension_numbers = #tpu.dot_dimension_numbers<[1], [1], [0], [0], [0, 0, 1, 0], [], []>} : vector<8x8xf32>, vector<8x8xf32>, vector<8x8xf32> -> vector<8x8xf32>
    %cst_107 = arith.constant 0.353553385 : f32
    %290 = vector.broadcast %cst_107 : f32 to vector<8x8xf32>
    %291 = arith.mulf %289, %290 : vector<8x8xf32>
    %292 = vector.broadcast %285 : vector<1x8xf32> to vector<8x8xf32>
    %293 = arith.addf %291, %292 : vector<8x8xf32>
    %cst_108 = arith.constant dense<0xFF800000> : vector<8xf32>
    %294 = vector.multi_reduction <maximumf>, %293, %cst_108 [1] : vector<8x8xf32> to vector<8xf32>
    %295 = vector.shape_cast %294 : vector<8xf32> to vector<8x1xf32>
    %296 = vector.broadcast %295 : vector<8x1xf32> to vector<8x8xf32>
    %297 = arith.subf %293, %296 : vector<8x8xf32>
    %298 = math.exp %297 : vector<8x8xf32>
    %cst_109 = arith.constant dense<0.000000e+00> : vector<8xf32>
    %299 = vector.multi_reduction <add>, %298, %cst_109 [1] : vector<8x8xf32> to vector<8xf32>
    %300 = vector.shape_cast %299 : vector<8xf32> to vector<8x1xf32>
    %301 = vector.broadcast %300 : vector<8x1xf32> to vector<8x8xf32>
    %302 = arith.divf %298, %301 : vector<8x8xf32>
    %cst_110 = arith.constant dense<0.000000e+00> : vector<8x8xf32>
    %303 = tpu.matmul %302, %288, %cst_110 {dimension_numbers = #tpu.dot_dimension_numbers<[1], [0], [0], [1], [0, 0, 1, 1], [], []>} : vector<8x8xf32>, vector<8x8xf32>, vector<8x8xf32> -> vector<8x8xf32>
    %304 = vector.extract_strided_slice %32 {offsets = [0, 0], sizes = [8, 32], strides = [1, 1]} : vector<32x32xf32> to vector<8x32xf32>
    %cst_111 = arith.constant dense<0.000000e+00> : vector<8x32xf32>
    %305 = tpu.matmul %303, %304, %cst_111 {dimension_numbers = #tpu.dot_dimension_numbers<[1], [0], [0], [1], [0, 0, 1, 1], [], []>} : vector<8x8xf32>, vector<8x32xf32>, vector<8x32xf32> -> vector<8x32xf32>
    %306 = vector.extract_strided_slice %284 {offsets = [0, 8], sizes = [8, 8], strides = [1, 1]} : vector<16x96xf32> to vector<8x8xf32>
    %307 = vector.extract_strided_slice %284 {offsets = [0, 40], sizes = [8, 8], strides = [1, 1]} : vector<16x96xf32> to vector<8x8xf32>
    %308 = vector.extract_strided_slice %284 {offsets = [0, 72], sizes = [8, 8], strides = [1, 1]} : vector<16x96xf32> to vector<8x8xf32>
    %cst_112 = arith.constant dense<0.000000e+00> : vector<8x8xf32>
    %309 = tpu.matmul %306, %307, %cst_112 {dimension_numbers = #tpu.dot_dimension_numbers<[1], [1], [0], [0], [0, 0, 1, 0], [], []>} : vector<8x8xf32>, vector<8x8xf32>, vector<8x8xf32> -> vector<8x8xf32>
    %cst_113 = arith.constant 0.353553385 : f32
    %310 = vector.broadcast %cst_113 : f32 to vector<8x8xf32>
    %311 = arith.mulf %309, %310 : vector<8x8xf32>
    %312 = vector.broadcast %285 : vector<1x8xf32> to vector<8x8xf32>
    %313 = arith.addf %311, %312 : vector<8x8xf32>
    %cst_114 = arith.constant dense<0xFF800000> : vector<8xf32>
    %314 = vector.multi_reduction <maximumf>, %313, %cst_114 [1] : vector<8x8xf32> to vector<8xf32>
    %315 = vector.shape_cast %314 : vector<8xf32> to vector<8x1xf32>
    %316 = vector.broadcast %315 : vector<8x1xf32> to vector<8x8xf32>
    %317 = arith.subf %313, %316 : vector<8x8xf32>
    %318 = math.exp %317 : vector<8x8xf32>
    %cst_115 = arith.constant dense<0.000000e+00> : vector<8xf32>
    %319 = vector.multi_reduction <add>, %318, %cst_115 [1] : vector<8x8xf32> to vector<8xf32>
    %320 = vector.shape_cast %319 : vector<8xf32> to vector<8x1xf32>
    %321 = vector.broadcast %320 : vector<8x1xf32> to vector<8x8xf32>
    %322 = arith.divf %318, %321 : vector<8x8xf32>
    %cst_116 = arith.constant dense<0.000000e+00> : vector<8x8xf32>
    %323 = tpu.matmul %322, %308, %cst_116 {dimension_numbers = #tpu.dot_dimension_numbers<[1], [0], [0], [1], [0, 0, 1, 1], [], []>} : vector<8x8xf32>, vector<8x8xf32>, vector<8x8xf32> -> vector<8x8xf32>
    %324 = vector.extract_strided_slice %32 {offsets = [8, 0], sizes = [8, 32], strides = [1, 1]} : vector<32x32xf32> to vector<8x32xf32>
    %cst_117 = arith.constant dense<0.000000e+00> : vector<8x32xf32>
    %325 = tpu.matmul %323, %324, %cst_117 {dimension_numbers = #tpu.dot_dimension_numbers<[1], [0], [0], [1], [0, 0, 1, 1], [], []>} : vector<8x8xf32>, vector<8x32xf32>, vector<8x32xf32> -> vector<8x32xf32>
    %326 = arith.addf %305, %325 : vector<8x32xf32>
    %327 = vector.extract_strided_slice %284 {offsets = [0, 16], sizes = [8, 8], strides = [1, 1]} : vector<16x96xf32> to vector<8x8xf32>
    %328 = vector.extract_strided_slice %284 {offsets = [0, 48], sizes = [8, 8], strides = [1, 1]} : vector<16x96xf32> to vector<8x8xf32>
    %329 = vector.extract_strided_slice %284 {offsets = [0, 80], sizes = [8, 8], strides = [1, 1]} : vector<16x96xf32> to vector<8x8xf32>
    %cst_118 = arith.constant dense<0.000000e+00> : vector<8x8xf32>
    %330 = tpu.matmul %327, %328, %cst_118 {dimension_numbers = #tpu.dot_dimension_numbers<[1], [1], [0], [0], [0, 0, 1, 0], [], []>} : vector<8x8xf32>, vector<8x8xf32>, vector<8x8xf32> -> vector<8x8xf32>
    %cst_119 = arith.constant 0.353553385 : f32
    %331 = vector.broadcast %cst_119 : f32 to vector<8x8xf32>
    %332 = arith.mulf %330, %331 : vector<8x8xf32>
    %333 = vector.broadcast %285 : vector<1x8xf32> to vector<8x8xf32>
    %334 = arith.addf %332, %333 : vector<8x8xf32>
    %cst_120 = arith.constant dense<0xFF800000> : vector<8xf32>
    %335 = vector.multi_reduction <maximumf>, %334, %cst_120 [1] : vector<8x8xf32> to vector<8xf32>
    %336 = vector.shape_cast %335 : vector<8xf32> to vector<8x1xf32>
    %337 = vector.broadcast %336 : vector<8x1xf32> to vector<8x8xf32>
    %338 = arith.subf %334, %337 : vector<8x8xf32>
    %339 = math.exp %338 : vector<8x8xf32>
    %cst_121 = arith.constant dense<0.000000e+00> : vector<8xf32>
    %340 = vector.multi_reduction <add>, %339, %cst_121 [1] : vector<8x8xf32> to vector<8xf32>
    %341 = vector.shape_cast %340 : vector<8xf32> to vector<8x1xf32>
    %342 = vector.broadcast %341 : vector<8x1xf32> to vector<8x8xf32>
    %343 = arith.divf %339, %342 : vector<8x8xf32>
    %cst_122 = arith.constant dense<0.000000e+00> : vector<8x8xf32>
    %344 = tpu.matmul %343, %329, %cst_122 {dimension_numbers = #tpu.dot_dimension_numbers<[1], [0], [0], [1], [0, 0, 1, 1], [], []>} : vector<8x8xf32>, vector<8x8xf32>, vector<8x8xf32> -> vector<8x8xf32>
    %345 = vector.extract_strided_slice %32 {offsets = [16, 0], sizes = [8, 32], strides = [1, 1]} : vector<32x32xf32> to vector<8x32xf32>
    %cst_123 = arith.constant dense<0.000000e+00> : vector<8x32xf32>
    %346 = tpu.matmul %344, %345, %cst_123 {dimension_numbers = #tpu.dot_dimension_numbers<[1], [0], [0], [1], [0, 0, 1, 1], [], []>} : vector<8x8xf32>, vector<8x32xf32>, vector<8x32xf32> -> vector<8x32xf32>
    %347 = arith.addf %326, %346 : vector<8x32xf32>
    %348 = vector.extract_strided_slice %284 {offsets = [0, 24], sizes = [8, 8], strides = [1, 1]} : vector<16x96xf32> to vector<8x8xf32>
    %349 = vector.extract_strided_slice %284 {offsets = [0, 56], sizes = [8, 8], strides = [1, 1]} : vector<16x96xf32> to vector<8x8xf32>
    %350 = vector.extract_strided_slice %284 {offsets = [0, 88], sizes = [8, 8], strides = [1, 1]} : vector<16x96xf32> to vector<8x8xf32>
    %cst_124 = arith.constant dense<0.000000e+00> : vector<8x8xf32>
    %351 = tpu.matmul %348, %349, %cst_124 {dimension_numbers = #tpu.dot_dimension_numbers<[1], [1], [0], [0], [0, 0, 1, 0], [], []>} : vector<8x8xf32>, vector<8x8xf32>, vector<8x8xf32> -> vector<8x8xf32>
    %cst_125 = arith.constant 0.353553385 : f32
    %352 = vector.broadcast %cst_125 : f32 to vector<8x8xf32>
    %353 = arith.mulf %351, %352 : vector<8x8xf32>
    %354 = vector.broadcast %285 : vector<1x8xf32> to vector<8x8xf32>
    %355 = arith.addf %353, %354 : vector<8x8xf32>
    %cst_126 = arith.constant dense<0xFF800000> : vector<8xf32>
    %356 = vector.multi_reduction <maximumf>, %355, %cst_126 [1] : vector<8x8xf32> to vector<8xf32>
    %357 = vector.shape_cast %356 : vector<8xf32> to vector<8x1xf32>
    %358 = vector.broadcast %357 : vector<8x1xf32> to vector<8x8xf32>
    %359 = arith.subf %355, %358 : vector<8x8xf32>
    %360 = math.exp %359 : vector<8x8xf32>
    %cst_127 = arith.constant dense<0.000000e+00> : vector<8xf32>
    %361 = vector.multi_reduction <add>, %360, %cst_127 [1] : vector<8x8xf32> to vector<8xf32>
    %362 = vector.shape_cast %361 : vector<8xf32> to vector<8x1xf32>
    %363 = vector.broadcast %362 : vector<8x1xf32> to vector<8x8xf32>
    %364 = arith.divf %360, %363 : vector<8x8xf32>
    %cst_128 = arith.constant dense<0.000000e+00> : vector<8x8xf32>
    %365 = tpu.matmul %364, %350, %cst_128 {dimension_numbers = #tpu.dot_dimension_numbers<[1], [0], [0], [1], [0, 0, 1, 1], [], []>} : vector<8x8xf32>, vector<8x8xf32>, vector<8x8xf32> -> vector<8x8xf32>
    %366 = vector.extract_strided_slice %32 {offsets = [24, 0], sizes = [8, 32], strides = [1, 1]} : vector<32x32xf32> to vector<8x32xf32>
    %cst_129 = arith.constant dense<0.000000e+00> : vector<8x32xf32>
    %367 = tpu.matmul %365, %366, %cst_129 {dimension_numbers = #tpu.dot_dimension_numbers<[1], [0], [0], [1], [0, 0, 1, 1], [], []>} : vector<8x8xf32>, vector<8x32xf32>, vector<8x32xf32> -> vector<8x32xf32>
    %368 = arith.addf %347, %367 : vector<8x32xf32>
    %369 = vector.extract_strided_slice %42 {offsets = [1, 0], sizes = [1, 8], strides = [1, 1]} : vector<2x8xf32> to vector<1x8xf32>
    %370 = vector.extract_strided_slice %284 {offsets = [8, 0], sizes = [8, 8], strides = [1, 1]} : vector<16x96xf32> to vector<8x8xf32>
    %371 = vector.extract_strided_slice %284 {offsets = [8, 32], sizes = [8, 8], strides = [1, 1]} : vector<16x96xf32> to vector<8x8xf32>
    %372 = vector.extract_strided_slice %284 {offsets = [8, 64], sizes = [8, 8], strides = [1, 1]} : vector<16x96xf32> to vector<8x8xf32>
    %cst_130 = arith.constant dense<0.000000e+00> : vector<8x8xf32>
    %373 = tpu.matmul %370, %371, %cst_130 {dimension_numbers = #tpu.dot_dimension_numbers<[1], [1], [0], [0], [0, 0, 1, 0], [], []>} : vector<8x8xf32>, vector<8x8xf32>, vector<8x8xf32> -> vector<8x8xf32>
    %cst_131 = arith.constant 0.353553385 : f32
    %374 = vector.broadcast %cst_131 : f32 to vector<8x8xf32>
    %375 = arith.mulf %373, %374 : vector<8x8xf32>
    %376 = vector.broadcast %369 : vector<1x8xf32> to vector<8x8xf32>
    %377 = arith.addf %375, %376 : vector<8x8xf32>
    %cst_132 = arith.constant dense<0xFF800000> : vector<8xf32>
    %378 = vector.multi_reduction <maximumf>, %377, %cst_132 [1] : vector<8x8xf32> to vector<8xf32>
    %379 = vector.shape_cast %378 : vector<8xf32> to vector<8x1xf32>
    %380 = vector.broadcast %379 : vector<8x1xf32> to vector<8x8xf32>
    %381 = arith.subf %377, %380 : vector<8x8xf32>
    %382 = math.exp %381 : vector<8x8xf32>
    %cst_133 = arith.constant dense<0.000000e+00> : vector<8xf32>
    %383 = vector.multi_reduction <add>, %382, %cst_133 [1] : vector<8x8xf32> to vector<8xf32>
    %384 = vector.shape_cast %383 : vector<8xf32> to vector<8x1xf32>
    %385 = vector.broadcast %384 : vector<8x1xf32> to vector<8x8xf32>
    %386 = arith.divf %382, %385 : vector<8x8xf32>
    %cst_134 = arith.constant dense<0.000000e+00> : vector<8x8xf32>
    %387 = tpu.matmul %386, %372, %cst_134 {dimension_numbers = #tpu.dot_dimension_numbers<[1], [0], [0], [1], [0, 0, 1, 1], [], []>} : vector<8x8xf32>, vector<8x8xf32>, vector<8x8xf32> -> vector<8x8xf32>
    %388 = vector.extract_strided_slice %32 {offsets = [0, 0], sizes = [8, 32], strides = [1, 1]} : vector<32x32xf32> to vector<8x32xf32>
    %cst_135 = arith.constant dense<0.000000e+00> : vector<8x32xf32>
    %389 = tpu.matmul %387, %388, %cst_135 {dimension_numbers = #tpu.dot_dimension_numbers<[1], [0], [0], [1], [0, 0, 1, 1], [], []>} : vector<8x8xf32>, vector<8x32xf32>, vector<8x32xf32> -> vector<8x32xf32>
    %390 = vector.extract_strided_slice %284 {offsets = [8, 8], sizes = [8, 8], strides = [1, 1]} : vector<16x96xf32> to vector<8x8xf32>
    %391 = vector.extract_strided_slice %284 {offsets = [8, 40], sizes = [8, 8], strides = [1, 1]} : vector<16x96xf32> to vector<8x8xf32>
    %392 = vector.extract_strided_slice %284 {offsets = [8, 72], sizes = [8, 8], strides = [1, 1]} : vector<16x96xf32> to vector<8x8xf32>
    %cst_136 = arith.constant dense<0.000000e+00> : vector<8x8xf32>
    %393 = tpu.matmul %390, %391, %cst_136 {dimension_numbers = #tpu.dot_dimension_numbers<[1], [1], [0], [0], [0, 0, 1, 0], [], []>} : vector<8x8xf32>, vector<8x8xf32>, vector<8x8xf32> -> vector<8x8xf32>
    %cst_137 = arith.constant 0.353553385 : f32
    %394 = vector.broadcast %cst_137 : f32 to vector<8x8xf32>
    %395 = arith.mulf %393, %394 : vector<8x8xf32>
    %396 = vector.broadcast %369 : vector<1x8xf32> to vector<8x8xf32>
    %397 = arith.addf %395, %396 : vector<8x8xf32>
    %cst_138 = arith.constant dense<0xFF800000> : vector<8xf32>
    %398 = vector.multi_reduction <maximumf>, %397, %cst_138 [1] : vector<8x8xf32> to vector<8xf32>
    %399 = vector.shape_cast %398 : vector<8xf32> to vector<8x1xf32>
    %400 = vector.broadcast %399 : vector<8x1xf32> to vector<8x8xf32>
    %401 = arith.subf %397, %400 : vector<8x8xf32>
    %402 = math.exp %401 : vector<8x8xf32>
    %cst_139 = arith.constant dense<0.000000e+00> : vector<8xf32>
    %403 = vector.multi_reduction <add>, %402, %cst_139 [1] : vector<8x8xf32> to vector<8xf32>
    %404 = vector.shape_cast %403 : vector<8xf32> to vector<8x1xf32>
    %405 = vector.broadcast %404 : vector<8x1xf32> to vector<8x8xf32>
    %406 = arith.divf %402, %405 : vector<8x8xf32>
    %cst_140 = arith.constant dense<0.000000e+00> : vector<8x8xf32>
    %407 = tpu.matmul %406, %392, %cst_140 {dimension_numbers = #tpu.dot_dimension_numbers<[1], [0], [0], [1], [0, 0, 1, 1], [], []>} : vector<8x8xf32>, vector<8x8xf32>, vector<8x8xf32> -> vector<8x8xf32>
    %408 = vector.extract_strided_slice %32 {offsets = [8, 0], sizes = [8, 32], strides = [1, 1]} : vector<32x32xf32> to vector<8x32xf32>
    %cst_141 = arith.constant dense<0.000000e+00> : vector<8x32xf32>
    %409 = tpu.matmul %407, %408, %cst_141 {dimension_numbers = #tpu.dot_dimension_numbers<[1], [0], [0], [1], [0, 0, 1, 1], [], []>} : vector<8x8xf32>, vector<8x32xf32>, vector<8x32xf32> -> vector<8x32xf32>
    %410 = arith.addf %389, %409 : vector<8x32xf32>
    %411 = vector.extract_strided_slice %284 {offsets = [8, 16], sizes = [8, 8], strides = [1, 1]} : vector<16x96xf32> to vector<8x8xf32>
    %412 = vector.extract_strided_slice %284 {offsets = [8, 48], sizes = [8, 8], strides = [1, 1]} : vector<16x96xf32> to vector<8x8xf32>
    %413 = vector.extract_strided_slice %284 {offsets = [8, 80], sizes = [8, 8], strides = [1, 1]} : vector<16x96xf32> to vector<8x8xf32>
    %cst_142 = arith.constant dense<0.000000e+00> : vector<8x8xf32>
    %414 = tpu.matmul %411, %412, %cst_142 {dimension_numbers = #tpu.dot_dimension_numbers<[1], [1], [0], [0], [0, 0, 1, 0], [], []>} : vector<8x8xf32>, vector<8x8xf32>, vector<8x8xf32> -> vector<8x8xf32>
    %cst_143 = arith.constant 0.353553385 : f32
    %415 = vector.broadcast %cst_143 : f32 to vector<8x8xf32>
    %416 = arith.mulf %414, %415 : vector<8x8xf32>
    %417 = vector.broadcast %369 : vector<1x8xf32> to vector<8x8xf32>
    %418 = arith.addf %416, %417 : vector<8x8xf32>
    %cst_144 = arith.constant dense<0xFF800000> : vector<8xf32>
    %419 = vector.multi_reduction <maximumf>, %418, %cst_144 [1] : vector<8x8xf32> to vector<8xf32>
    %420 = vector.shape_cast %419 : vector<8xf32> to vector<8x1xf32>
    %421 = vector.broadcast %420 : vector<8x1xf32> to vector<8x8xf32>
    %422 = arith.subf %418, %421 : vector<8x8xf32>
    %423 = math.exp %422 : vector<8x8xf32>
    %cst_145 = arith.constant dense<0.000000e+00> : vector<8xf32>
    %424 = vector.multi_reduction <add>, %423, %cst_145 [1] : vector<8x8xf32> to vector<8xf32>
    %425 = vector.shape_cast %424 : vector<8xf32> to vector<8x1xf32>
    %426 = vector.broadcast %425 : vector<8x1xf32> to vector<8x8xf32>
    %427 = arith.divf %423, %426 : vector<8x8xf32>
    %cst_146 = arith.constant dense<0.000000e+00> : vector<8x8xf32>
    %428 = tpu.matmul %427, %413, %cst_146 {dimension_numbers = #tpu.dot_dimension_numbers<[1], [0], [0], [1], [0, 0, 1, 1], [], []>} : vector<8x8xf32>, vector<8x8xf32>, vector<8x8xf32> -> vector<8x8xf32>
    %429 = vector.extract_strided_slice %32 {offsets = [16, 0], sizes = [8, 32], strides = [1, 1]} : vector<32x32xf32> to vector<8x32xf32>
    %cst_147 = arith.constant dense<0.000000e+00> : vector<8x32xf32>
    %430 = tpu.matmul %428, %429, %cst_147 {dimension_numbers = #tpu.dot_dimension_numbers<[1], [0], [0], [1], [0, 0, 1, 1], [], []>} : vector<8x8xf32>, vector<8x32xf32>, vector<8x32xf32> -> vector<8x32xf32>
    %431 = arith.addf %410, %430 : vector<8x32xf32>
    %432 = vector.extract_strided_slice %284 {offsets = [8, 24], sizes = [8, 8], strides = [1, 1]} : vector<16x96xf32> to vector<8x8xf32>
    %433 = vector.extract_strided_slice %284 {offsets = [8, 56], sizes = [8, 8], strides = [1, 1]} : vector<16x96xf32> to vector<8x8xf32>
    %434 = vector.extract_strided_slice %284 {offsets = [8, 88], sizes = [8, 8], strides = [1, 1]} : vector<16x96xf32> to vector<8x8xf32>
    %cst_148 = arith.constant dense<0.000000e+00> : vector<8x8xf32>
    %435 = tpu.matmul %432, %433, %cst_148 {dimension_numbers = #tpu.dot_dimension_numbers<[1], [1], [0], [0], [0, 0, 1, 0], [], []>} : vector<8x8xf32>, vector<8x8xf32>, vector<8x8xf32> -> vector<8x8xf32>
    %cst_149 = arith.constant 0.353553385 : f32
    %436 = vector.broadcast %cst_149 : f32 to vector<8x8xf32>
    %437 = arith.mulf %435, %436 : vector<8x8xf32>
    %438 = vector.broadcast %369 : vector<1x8xf32> to vector<8x8xf32>
    %439 = arith.addf %437, %438 : vector<8x8xf32>
    %cst_150 = arith.constant dense<0xFF800000> : vector<8xf32>
    %440 = vector.multi_reduction <maximumf>, %439, %cst_150 [1] : vector<8x8xf32> to vector<8xf32>
    %441 = vector.shape_cast %440 : vector<8xf32> to vector<8x1xf32>
    %442 = vector.broadcast %441 : vector<8x1xf32> to vector<8x8xf32>
    %443 = arith.subf %439, %442 : vector<8x8xf32>
    %444 = math.exp %443 : vector<8x8xf32>
    %cst_151 = arith.constant dense<0.000000e+00> : vector<8xf32>
    %445 = vector.multi_reduction <add>, %444, %cst_151 [1] : vector<8x8xf32> to vector<8xf32>
    %446 = vector.shape_cast %445 : vector<8xf32> to vector<8x1xf32>
    %447 = vector.broadcast %446 : vector<8x1xf32> to vector<8x8xf32>
    %448 = arith.divf %444, %447 : vector<8x8xf32>
    %cst_152 = arith.constant dense<0.000000e+00> : vector<8x8xf32>
    %449 = tpu.matmul %448, %434, %cst_152 {dimension_numbers = #tpu.dot_dimension_numbers<[1], [0], [0], [1], [0, 0, 1, 1], [], []>} : vector<8x8xf32>, vector<8x8xf32>, vector<8x8xf32> -> vector<8x8xf32>
    %450 = vector.extract_strided_slice %32 {offsets = [24, 0], sizes = [8, 32], strides = [1, 1]} : vector<32x32xf32> to vector<8x32xf32>
    %cst_153 = arith.constant dense<0.000000e+00> : vector<8x32xf32>
    %451 = tpu.matmul %449, %450, %cst_153 {dimension_numbers = #tpu.dot_dimension_numbers<[1], [0], [0], [1], [0, 0, 1, 1], [], []>} : vector<8x8xf32>, vector<8x32xf32>, vector<8x32xf32> -> vector<8x32xf32>
    %452 = arith.addf %431, %451 : vector<8x32xf32>
    %453 = tpu.concatenate %368, %452 in 0 : vector<8x32xf32>, vector<8x32xf32> -> vector<16x32xf32>
    %454 = vector.broadcast %33 : vector<1x32xf32> to vector<16x32xf32>
    %455 = arith.addf %453, %454 : vector<16x32xf32>
    %456 = arith.addf %455, %281 : vector<16x32xf32>
    %cst_154 = arith.constant dense<0.000000e+00> : vector<16xf32>
    %457 = vector.multi_reduction <add>, %456, %cst_154 [1] : vector<16x32xf32> to vector<16xf32>
    %458 = vector.shape_cast %457 : vector<16xf32> to vector<16x1xf32>
    %cst_155 = arith.constant 3.200000e+01 : f32
    %459 = vector.broadcast %cst_155 : f32 to vector<16x1xf32>
    %460 = arith.divf %458, %459 : vector<16x1xf32>
    %461 = vector.broadcast %460 : vector<16x1xf32> to vector<16x32xf32>
    %462 = arith.subf %456, %461 : vector<16x32xf32>
    %463 = arith.mulf %462, %462 : vector<16x32xf32>
    %cst_156 = arith.constant dense<0.000000e+00> : vector<16xf32>
    %464 = vector.multi_reduction <add>, %463, %cst_156 [1] : vector<16x32xf32> to vector<16xf32>
    %465 = vector.shape_cast %464 : vector<16xf32> to vector<16x1xf32>
    %cst_157 = arith.constant 3.200000e+01 : f32
    %466 = vector.broadcast %cst_157 : f32 to vector<16x1xf32>
    %467 = arith.divf %465, %466 : vector<16x1xf32>
    %468 = vector.broadcast %460 : vector<16x1xf32> to vector<16x32xf32>
    %469 = arith.subf %456, %468 : vector<16x32xf32>
    %cst_158 = arith.constant 9.99999996E-13 : f32
    %470 = vector.broadcast %cst_158 : f32 to vector<16x1xf32>
    %471 = arith.addf %467, %470 : vector<16x1xf32>
    %472 = math.rsqrt %471 : vector<16x1xf32>
    %473 = vector.broadcast %472 : vector<16x1xf32> to vector<16x32xf32>
    %474 = arith.mulf %469, %473 : vector<16x32xf32>
    %475 = vector.broadcast %34 : vector<1x32xf32> to vector<16x32xf32>
    %476 = arith.mulf %474, %475 : vector<16x32xf32>
    %477 = vector.broadcast %35 : vector<1x32xf32> to vector<16x32xf32>
    %478 = arith.addf %476, %477 : vector<16x32xf32>
    %cst_159 = arith.constant dense<0.000000e+00> : vector<16x64xf32>
    %479 = tpu.matmul %478, %36, %cst_159 {dimension_numbers = #tpu.dot_dimension_numbers<[1], [0], [0], [1], [0, 0, 1, 1], [], []>} : vector<16x32xf32>, vector<32x64xf32>, vector<16x64xf32> -> vector<16x64xf32>
    %480 = vector.broadcast %37 : vector<1x64xf32> to vector<16x64xf32>
    %481 = arith.addf %479, %480 : vector<16x64xf32>
    %cst_160 = arith.constant 5.000000e-01 : f32
    %482 = vector.broadcast %cst_160 : f32 to vector<16x64xf32>
    %483 = arith.mulf %482, %481 : vector<16x64xf32>
    %cst_161 = arith.constant 4.471500e-02 : f32
    %484 = vector.broadcast %cst_161 : f32 to vector<16x64xf32>
    %485 = arith.mulf %484, %481 : vector<16x64xf32>
    %486 = arith.mulf %485, %481 : vector<16x64xf32>
    %487 = arith.mulf %486, %481 : vector<16x64xf32>
    %488 = arith.addf %481, %487 : vector<16x64xf32>
    %cst_162 = arith.constant 0.797884583 : f32
    %489 = vector.broadcast %cst_162 : f32 to vector<16x64xf32>
    %490 = arith.mulf %489, %488 : vector<16x64xf32>
    %491 = math.tanh %490 : vector<16x64xf32>
    %cst_163 = arith.constant 1.000000e+00 : f32
    %492 = vector.broadcast %cst_163 : f32 to vector<16x64xf32>
    %493 = arith.addf %492, %491 : vector<16x64xf32>
    %494 = arith.mulf %483, %493 : vector<16x64xf32>
    %cst_164 = arith.constant dense<0.000000e+00> : vector<16x32xf32>
    %495 = tpu.matmul %494, %38, %cst_164 {dimension_numbers = #tpu.dot_dimension_numbers<[1], [0], [0], [1], [0, 0, 1, 1], [], []>} : vector<16x64xf32>, vector<64x32xf32>, vector<16x32xf32> -> vector<16x32xf32>
    %496 = vector.broadcast %39 : vector<1x32xf32> to vector<16x32xf32>
    %497 = arith.addf %495, %496 : vector<16x32xf32>
    %498 = arith.addf %497, %478 : vector<16x32xf32>
    %cst_165 = arith.constant dense<0.000000e+00> : vector<16xf32>
    %499 = vector.multi_reduction <add>, %498, %cst_165 [1] : vector<16x32xf32> to vector<16xf32>
    %500 = vector.shape_cast %499 : vector<16xf32> to vector<16x1xf32>
    %cst_166 = arith.constant 3.200000e+01 : f32
    %501 = vector.broadcast %cst_166 : f32 to vector<16x1xf32>
    %502 = arith.divf %500, %501 : vector<16x1xf32>
    %503 = vector.broadcast %502 : vector<16x1xf32> to vector<16x32xf32>
    %504 = arith.subf %498, %503 : vector<16x32xf32>
    %505 = arith.mulf %504, %504 : vector<16x32xf32>
    %cst_167 = arith.constant dense<0.000000e+00> : vector<16xf32>
    %506 = vector.multi_reduction <add>, %505, %cst_167 [1] : vector<16x32xf32> to vector<16xf32>
    %507 = vector.shape_cast %506 : vector<16xf32> to vector<16x1xf32>
    %cst_168 = arith.constant 3.200000e+01 : f32
    %508 = vector.broadcast %cst_168 : f32 to vector<16x1xf32>
    %509 = arith.divf %507, %508 : vector<16x1xf32>
    %510 = vector.broadcast %502 : vector<16x1xf32> to vector<16x32xf32>
    %511 = arith.subf %498, %510 : vector<16x32xf32>
    %cst_169 = arith.constant 9.99999996E-13 : f32
    %512 = vector.broadcast %cst_169 : f32 to vector<16x1xf32>
    %513 = arith.addf %509, %512 : vector<16x1xf32>
    %514 = math.rsqrt %513 : vector<16x1xf32>
    %515 = vector.broadcast %514 : vector<16x1xf32> to vector<16x32xf32>
    %516 = arith.mulf %511, %515 : vector<16x32xf32>
    %517 = vector.broadcast %40 : vector<1x32xf32> to vector<16x32xf32>
    %518 = arith.mulf %516, %517 : vector<16x32xf32>
    %519 = vector.broadcast %41 : vector<1x32xf32> to vector<16x32xf32>
    %520 = arith.addf %518, %519 : vector<16x32xf32>
    %521 = tpu.iota {dimensions = array<i32: 1>} : vector<2x16xi32>
    %522 = tpu.iota {dimensions = array<i32: 0>} : vector<2x16xi32>
    %c8_i32 = arith.constant 8 : i32
    %523 = vector.broadcast %c8_i32 : i32 to vector<2x16xi32>
    %524 = arith.muli %522, %523 : vector<2x16xi32>
    %525 = arith.cmpi eq, %521, %524 : vector<2x16xi32>
    %526 = arith.extui %525 : vector<2x16xi1> to vector<2x16xi32>
    %527 = arith.sitofp %526 : vector<2x16xi32> to vector<2x16xf32>
    %cst_170 = arith.constant dense<0.000000e+00> : vector<2x32xf32>
    %528 = tpu.matmul %527, %520, %cst_170 {dimension_numbers = #tpu.dot_dimension_numbers<[1], [0], [0], [1], [0, 0, 1, 1], [], []>} : vector<2x16xf32>, vector<16x32xf32>, vector<2x32xf32> -> vector<2x32xf32>
    %c0_171 = arith.constant 0 : index
    %c0_172 = arith.constant 0 : index
    %529 = vector.load %arg18[%c0_171, %c0_172] : memref<32x32xf32, #tpu.memory_space<vmem>>, vector<32x32xf32>
    %cst_173 = arith.constant dense<0.000000e+00> : vector<2x32xf32>
    %530 = tpu.matmul %528, %529, %cst_173 {dimension_numbers = #tpu.dot_dimension_numbers<[1], [0], [0], [1], [0, 0, 1, 1], [], []>} : vector<2x32xf32>, vector<32x32xf32>, vector<2x32xf32> -> vector<2x32xf32>
    %c0_174 = arith.constant 0 : index
    %c0_175 = arith.constant 0 : index
    %531 = vector.load %arg19[%c0_174, %c0_175] : memref<1x32xf32, #tpu.memory_space<vmem>>, vector<1x32xf32>
    %532 = vector.broadcast %531 : vector<1x32xf32> to vector<2x32xf32>
    %533 = arith.addf %530, %532 : vector<2x32xf32>
    %534 = math.tanh %533 : vector<2x32xf32>
    %c0_176 = arith.constant 0 : index
    %c0_177 = arith.constant 0 : index
    %535 = vector.load %arg20[%c0_176, %c0_177] : memref<32x2xf32, #tpu.memory_space<vmem>>, vector<32x2xf32>
    %cst_178 = arith.constant dense<0.000000e+00> : vector<2x2xf32>
    %536 = tpu.matmul %534, %535, %cst_178 {dimension_numbers = #tpu.dot_dimension_numbers<[1], [0], [0], [1], [0, 0, 1, 1], [], []>} : vector<2x32xf32>, vector<32x2xf32>, vector<2x2xf32> -> vector<2x2xf32>
    %c0_179 = arith.constant 0 : index
    %c0_180 = arith.constant 0 : index
    %537 = vector.load %arg21[%c0_179, %c0_180] : memref<1x2xf32, #tpu.memory_space<vmem>>, vector<1x2xf32>
    %538 = vector.broadcast %537 : vector<1x2xf32> to vector<2x2xf32>
    %539 = arith.addf %536, %538 : vector<2x2xf32>
    %c0_181 = arith.constant 0 : index
    %c0_182 = arith.constant 0 : index
    %540 = vector.load %arg22[%c0_181, %c0_182] : memref<2x2xf32, #tpu.memory_space<vmem>>, vector<2x2xf32>
    tpu.vector_store %arg22[%c0_181, %c0_182], %539 {strides = array<i32>} : memref<2x2xf32, #tpu.memory_space<vmem>>, vector<2x2xf32>,
    return
  }
}

</mosaic_0001>

<bundles_post_ra>
// kernel: albert_logits.1
= control target key start
LH: loop header
LB: loop body
LE: loop exit
PB: predicated region body
PF: predicated region fallthrough
CT: control target
= control target key end

     0   :  { %s6723_s0 = inlined_call_operand.vmem [shape: f32[16,16], index: 0, kind: input, shape index: {}]   ;;  %s6724_s1 = inlined_call_operand.vmem [shape: f32[2,8], index: 1, kind: input, shape index: {}]   ;;  %s6725_s2 = inlined_call_operand.vmem [shape: f32[1,16], index: 2, kind: input, shape index: {}]   ;;  %s6726_s3 = inlined_call_operand.vmem [shape: f32[1,16], index: 3, kind: input, shape index: {}]   ;;  %s6727_s4 = inlined_call_operand.vmem [shape: f32[16,32], index: 4, kind: input, shape index: {}]   ;;  %s6728_s5 = inlined_call_operand.vmem [shape: f32[1,32], index: 5, kind: input, shape index: {}]   ;;  %s6729_s6 = inlined_call_operand.vmem [shape: f32[32,96], index: 6, kind: input, shape index: {}]   ;;  %s6730_s7 = inlined_call_operand.vmem [shape: f32[1,96], index: 7, kind: input, shape index: {}]   ;;  %s6731_s8 = inlined_call_operand.vmem [shape: f32[32,32], index: 8, kind: input, shape index: {}]   ;;  %s6732_s9 = inlined_call_operand.vmem [shape: f32[1,32], index: 9, kind: input, shape index: {}]   ;;  %s6733_s10 = inlined_call_operand.vmem [shape: f32[1,32], index: 10, kind: input, shape index: {}]   ;;  %s6734_s11 = inlined_call_operand.vmem [shape: f32[1,32], index: 11, kind: input, shape index: {}]   ;;  %s6735_s12 = inlined_call_operand.vmem [shape: f32[32,64], index: 12, kind: input, shape index: {}]   ;;  %s6736_s13 = inlined_call_operand.vmem [shape: f32[1,64], index: 13, kind: input, shape index: {}]   ;;  %s6737_s14 = inlined_call_operand.vmem [shape: f32[64,32], index: 14, kind: input, shape index: {}]   ;;  %s6738_s15 = inlined_call_operand.vmem [shape: f32[1,32], index: 15, kind: input, shape index: {}]   ;;  %s6739_s16 = inlined_call_operand.vmem [shape: f32[1,32], index: 16, kind: input, shape index: {}]   ;;  %s6740_s17 = inlined_call_operand.vmem [shape: f32[1,32], index: 17, kind: input, shape index: {}]   ;;  %s6741_s18 = inlined_call_operand.vmem [shape: f32[32,32], index: 18, kind: input, shape index: {}]   ;;  %s6742_s19 = inlined_call_operand.vmem [shape: f32[1,32], index: 19, kind: input, shape index: {}]   ;;  %s6743_s20 = inlined_call_operand.vmem [shape: f32[32,2], index: 20, kind: input, shape index: {}]   ;;  %s6744_s21 = inlined_call_operand.vmem [shape: f32[1,2], index: 21, kind: input, shape index: {}]   ;;  %s6745_s22 = inlined_call_operand.hbm [shape: f32[2,2], index: 22, kind: output, shape index: {}]  }
   0x1   :  { %6753 = sst [smem:[#allocation5_spill]] %s6723_s0 }
   0x2   :  { %6754 = sst [smem:[#allocation6_spill]] %s6724_s1 }
   0x3   :  { %6755 = sst [smem:[#allocation7_spill]] %s6725_s2 }
   0x4   :  { %6756 = sst [smem:[#allocation8_spill]] %s6726_s3 }
   0x5   :  { %6757 = sst [smem:[#allocation9_spill]] %s6727_s4 }
   0x6   :  { %6758 = sst [smem:[#allocation10_spill]] %s6728_s5 }
   0x7   :  { %6759 = sst [smem:[#allocation11_spill]] %s6729_s6 }
   0x8   :  { %s6760_s29 = sld [smem:[#allocation5_spill]]  ;;  %vm76_vm0 = vcmask 130048  }
   0xe   :  { %v72_v0 = vld [vmem:[%s6760_s29] sm:$0xff]  ;;  %v73_v1 = vld [vmem:[%s6760_s29 + $0x8] sm:$0xff] }
   0xf   :  { %27 = vsyncpa [#allocation3], 0  ;;  %v77_v2 = vsel %vm76_vm0, %v72_v0, 0.0  ;;  %v80_v3 = vsel %vm76_vm0, %v73_v1, 0.0  ;;  %s6761_s1 = sld [smem:[#allocation9_spill]]  ;;  %vm245_vm1 = vcmask 261120   ;;  %v406_v49 = vlaneseq }
  0x10   :  { %78 = vadd.xlane.f32.xlu0 %v77_v2  ;;  %s6762_s26 = sld [smem:[#allocation11_spill]]  ;;  %v5809_v41 = vmov 0.0   ;;  %vm5810_vm2 = vmmov 0   ;;  %v6012_v43 = vld [vmem:[%s6730_s7] ss:$0 sm:$0xff]  ;;  %s5812_s28 = smov 96  }
  0x11   :  { %s6763_s3 = sld [smem:[#allocation7_spill]]  ;;  %5333 = vmatprep.subr.mxu0 %v5809_v41  ;;  %5335 = vmatprep.mubr.msk.f32.mxu0 %vm5810_vm2, %v5809_v41  ;;  %s5813_s29 = smov 120   ;;  %vm330_vm3 = vcmask 64512   ;;  %v6035_v50 = vshrl.u32 %v406_v49, 7  ;;  %vm2422_vm4 = vcmask 523264   ;;  %vm5047_vm6 = vcmask 9216  }
  0x12   :  { %s6764_s30 = sld [smem:[#allocation8_spill]]  ;;  %s5814_s23 = smov 64  }
  0x13   :  { %s6765_s2 = sld [smem:[#allocation10_spill]]  ;;  %v408_v51 = vsub.s32 0, %v6035_v50  ;;  %s5816_s5 = smov 112  }
  0x14   :  { %81 = vadd.xlane.f32.xlu0 %v80_v3  ;;  %s6766_s0 = sld [smem:[#allocation6_spill]]  ;;  %s5817_s24 = smov 56  }
  0x15   :  { %v121_v14 = vld [vmem:[%s6761_s1 + $0x8] sm:$0xff]  ;;  %v120_v15 = vld [vmem:[%s6761_s1] sm:$0xff]  ;;  %s5815_s1 = smov 80   ;;  %s6751_s27 = smov 72  }
  0x16   :  { %5315 = vmatprep.subr.mxu1 %v121_v14  ;;  %v5957_v16 = vld [vmem:[%s6762_s26 + $0x18] sm:$0xff]  ;;  %v5972_v33 = vld [vmem:[%s6762_s26 + $0x10] sm:$0xff]  ;;  %v5979_v34 = vld [vmem:[%s6762_s26 + $0x8] sm:$0xff]  ;;  %s5820_s4 = smov 48   ;;  %s6749_s25 = smov 40  }
  0x17   :  { %5316 = vmatpush3.msra.mxu1 %v121_v14  ;;  %v5063_v24 = vld [vmem:[%s6763_s3] ss:$0 sm:$0xff]  ;;  %s5811_s3 = smov 88  }
  0x18   :  { %5317 = vmatprep.subr.mxu1 %v120_v15  ;;  %v5064_v26 = vld [vmem:[%s6764_s30] ss:$0 sm:$0xff]  ;;  %s5819_s30 = smov 104  }
  0x19   :  { %5318 = vmatpush3.msra.mxu1 %v120_v15  ;;  %v5986_v35 = vld [vmem:[%s6762_s26] sm:$0xff] }
  0x1a   :  { %5322 = vmatprep.subr.mxu1 %v5957_v16  ;;  %v5065_v37 = vld [vmem:[%s6765_s2] ss:$0 sm:$0xff] }
  0x1b   :  { %v6041_v52 = vld [vmem:[%s6766_s0] sm:$0x3] }
  0x1c   :  { %v6044_v53 = vrot.slane %v6041_v52, %v408_v51 }
  0x99   :  { %v79_v4 = vpop.xlane.xlu0 %78 }
  0x9a   :  { %v84_v5 = vmul.f32 0.0625, %v79_v4 }
  0x9c   :  { %v86_v6 = vsub.f32 %v72_v0, %v84_v5 }
  0x9d   :  { %v82_v7 = vpop.xlane.xlu0 %81 }
  0x9e   :  { %v85_v8 = vmul.f32 0.0625, %v82_v7  ;;  %v88_v9 = vmul.f32 %v86_v6, %v86_v6 }
  0xa0   :  { %v87_v10 = vsub.f32 %v73_v1, %v85_v8  ;;  %v90_v11 = vsel %vm76_vm0, %v88_v9, 0.0 }
  0xa1   :  { %91 = vadd.xlane.f32.xlu1 %v90_v11 }
  0xa2   :  { %v89_v12 = vmul.f32 %v87_v10, %v87_v10 }
  0xa4   :  { %v93_v13 = vsel %vm76_vm0, %v89_v12, 0.0 }
  0xa5   :  { %94 = vadd.xlane.f32.xlu1 %v93_v13 }
 0x12a   :  { %v92_v17 = vpop.xlane.xlu1 %91 }
 0x12b   :  { %v96_v18 = vmul.f32 0.0625, %v92_v17 }
 0x12d   :  { %v98_v19 = vadd.f32 1e-12, %v96_v18 }
 0x12e   :  { %v95_v20 = vpop.xlane.xlu1 %94 }
 0x12f   :  { %5687 = vrsqrt.f32 %v98_v19  ;;  %v97_v21 = vmul.f32 0.0625, %v95_v20  ;;  %v6071_v19 = vld [vmem:[%s6731_s8] sm:$0xff]  ;;  %v6077_v20 = vld [vmem:[%s6731_s8 + $0x8] sm:$0xff] }
 0x131   :  { %v99_v22 = vadd.f32 1e-12, %v97_v21 }
 0x133   :  { %5689 = vrsqrt.f32 %v99_v22 }
 0x13c   :  { %v5688_v23 = vpop.eup %5687 }
 0x13d   :  { %v102_v25 = vmul.f32 %v5688_v23, %v86_v6 }
 0x13f   :  { %v110_v27 = vmul.f32 %v5063_v24, %v102_v25 }
 0x140   :  { %v5690_v28 = vpop.eup %5689 }
 0x141   :  { %v103_v29 = vmul.f32 %v5690_v28, %v87_v10  ;;  %v118_v30 = vadd.f32 %v5064_v26, %v110_v27 }
 0x143   :  { %v111_v31 = vmul.f32 %v5063_v24, %v103_v29  ;;  %5319 = vmatprep.mubr.msk.f32.mxu1 %vm76_vm0, %v118_v30 }
 0x145   :  { %v119_v32 = vadd.f32 %v5064_v26, %v111_v31 }
 0x147   :  { %5320 = vmatmul.mubr.msk.f32.vlgmr.msra.gmra.mxu1 %vm76_vm0, %v119_v32 }
 0x148   :  { %5323 = vmatpush3.msra.mxu1 %v5957_v16 }
 0x149   :  { %5324 = vmatprep.subr.mxu1 %v5972_v33 }
 0x14a   :  { %5325 = vmatpush3.msra.mxu1 %v5972_v33 }
 0x14b   :  { %5326 = vmatprep.subr.mxu1 %v5979_v34 }
 0x14c   :  { %5327 = vmatpush3.msra.mxu1 %v5979_v34 }
 0x14d   :  { %5328 = vmatprep.subr.mxu1 %v5986_v35 }
 0x14e   :  { %5329 = vmatpush3.msra.mxu1 %v5986_v35 }
 0x14f   :  { %5343 = vmatprep.subr.mxu1 %v5809_v41 }
 0x207   :  { %v5321_v36 = vpop.f32.mrf.mxu1 }
 0x208   :  { %v5995_v40 = vadd.f32 %v5321_v36, %v5065_v37 }
 0x209   :  { %v201_v38 = vpop.f32.mrf.mxu1 }
 0x20a   :  { %v5993_v39 = vadd.f32 %v5065_v37, %v201_v38 }
 0x20c   :  { %5330 = vmatprep.mubr.msk.f32.mxu1 %vm245_vm1, %v5993_v39 }
 0x20d   :  { %5331 = vmatmul.mubr.msk.f32.vlgmr.msra.gmra.mxu1 %vm245_vm1, %v5995_v40 }
 0x20e   :  { %5345 = vmatprep.mubr.msk.f32.mxu1 %vm5810_vm2, %v5809_v41 }
 0x2cd   :  { %v6007_v42 = vpop.f32.mrf.mxu1 }
 0x2cf   :  { %v318_v44 = vpop.f32.mrf.mxu1 }
 0x2d0   :  { %v6015_v45 = vadd.f32 %v6012_v43, %v318_v44 }
 0x2d2   :  { %500 = vrot.lane.b32.xlu1 %v6015_v45, %s5811_s3  ;;  %328 = vrot.lane.b32.xlu0 %v6015_v45, %s5812_s28 }
 0x2d6   :  { %498 = vrot.lane.b32.xlu1 %v6015_v45, %s5813_s29 }
 0x344   :  { %v501_v46 = vpop.permute.xlu1 %500  ;;  %v329_v47 = vpop.permute.xlu0 %328 }
 0x345   :  { %5334 = vmatpush3.xpose.msk.msra.mxu0 %vm330_vm3, %v329_v47  ;;  %5344 = vmatpush3.xpose.msk.msra.mxu1 %vm330_vm3, %v501_v46  ;;  %v6103_v46 = vadd.f32 %v6007_v42, %v6012_v43 }
 0x346   :  { %5338 = vmatprep.subr.mxu0 %v5809_v41  ;;  %5353 = vmatprep.subr.mxu1 %v5809_v41 }
 0x348   :  { %v499_v48 = vpop.permute.xlu1 %498  ;;  %5336 = vmatmul.mubr.msk.f32.vlgmr.msra.gmra.mxu0 %vm330_vm3, %v6015_v45 }
 0x349   :  { %5346 = vmatmul.mubr.msk.f32.vlgmr.msra.gmra.mxu1 %vm330_vm3, %v499_v48  ;;  %5340 = vmatprep.mubr.msk.f32.mxu0 %vm5810_vm2, %v5809_v41 }
 0x34a   :  { %5355 = vmatprep.mubr.msk.f32.mxu1 %vm5810_vm2, %v5809_v41  ;;  %5354 = vmatpush3.msra.mxu1 %v6077_v20 }
 0x34b   :  { %5363 = vmatprep.subr.mxu1 %v5809_v41 }
 0x408   :  { %v401_v54 = vpop.f32.mrf.mxu0 }
 0x409   :  { %v405_v55 = vmul.f32 0.35355338, %v401_v54  ;;  %v572_v56 = vpop.f32.mrf.mxu1 }
 0x40a   :  { %v576_v57 = vmul.f32 0.35355338, %v572_v56  ;;  %v5337_v58 = vpop.f32.mrf.mxu0 }
 0x40b   :  { %v5347_v59 = vpop.f32.mrf.mxu1  ;;  %v410_v60 = vadd.f32 %v6044_v53, %v405_v55 }
 0x40c   :  { %v577_v61 = vadd.f32 %v576_v57, %v6044_v53 }
 0x40d   :  { %v411_v62 = vsel %vm330_vm3, %v410_v60, -inf }
 0x40e   :  { %412 = vmax.xlane.f32.xlu1 %v411_v62  ;;  %v578_v63 = vsel %vm330_vm3, %v577_v61, -inf }
 0x40f   :  { %579 = vmax.xlane.f32.xlu0 %v578_v63 }
 0x41f   :  { %422 = vrot.lane.b32.xlu1 %v6015_v45, %s5814_s23 }
 0x423   :  { %813 = vrot.lane.b32.xlu1 %v6015_v45, %s5815_s1 }
 0x427   :  { %811 = vrot.lane.b32.xlu1 %v6015_v45, %s5816_s5 }
 0x497   :  { %v413_v0 = vpop.xlane.xlu1 %412 }
 0x498   :  { %v414_v1 = vsub.f32 %v410_v60, %v413_v0  ;;  %v580_v2 = vpop.xlane.xlu0 %579 }
 0x499   :  { %v581_v3 = vsub.f32 %v577_v61, %v580_v2  ;;  %v6122_v61 = vld [vmem:[%s6731_s8 + $0x10] sm:$0xff] }
 0x49a   :  { %v415_v4 = vmul.f32 1.442695, %v414_v1 }
 0x49b   :  { %v582_v5 = vmul.f32 1.442695, %v581_v3  ;;  %v423_v6 = vpop.permute.xlu1 %422 }
 0x49c   :  { %5691 = vpow2.f32 %v415_v4  ;;  %5339 = vmatpush3.msra.mxu0 %v423_v6 }
 0x49d   :  { %5348 = vmatprep.subr.mxu0 %v5809_v41  ;;  %5693 = vpow2.f32 %v582_v5 }
 0x49f   :  { %v814_v22 = vpop.permute.xlu1 %813 }
 0x4a3   :  { %v812_v26 = vpop.permute.xlu1 %811 }
 0x4a9   :  { %v5692_v7 = vpop.eup %5691 }
 0x4aa   :  { %v417_v8 = vsel %vm330_vm3, %v5692_v7, 0.0  ;;  %v5694_v9 = vpop.eup %5693 }
 0x4ab   :  { %418 = vadd.xlane.f32.xlu0 %v417_v8  ;;  %v584_v10 = vsel %vm330_vm3, %v5694_v9, 0.0 }
 0x4af   :  { %585 = vadd.xlane.f32.xlu0 %v584_v10 }
 0x4c5   :  { %589 = vrot.lane.b32.xlu0 %v6015_v45, %s5817_s24 }
 0x534   :  { %v419_v11 = vpop.xlane.xlu0 %418 }
 0x535   :  { %5695 = vrcp.f32 %v419_v11 }
 0x538   :  { %v586_v12 = vpop.xlane.xlu0 %585 }
 0x539   :  { %5697 = vrcp.f32 %v586_v12 }
 0x53c   :  { %v590_v15 = vpop.permute.xlu0 %589 }
 0x542   :  { %v5696_v13 = vpop.eup %5695 }
 0x543   :  { %v421_v14 = vmul.f32 %v5696_v13, %v5692_v7 }
 0x545   :  { %5341 = vmatmul.mubr.msk.f32.vlgmr.msra.gmra.mxu0 %vm330_vm3, %v421_v14 }
 0x546   :  { %v5698_v17 = vpop.eup %5697  ;;  %5349 = vmatpush3.msra.mxu0 %v590_v15  ;;  %5350 = vmatprep.mubr.msk.f32.mxu0 %vm5810_vm2, %v5809_v41 }
 0x547   :  { %v588_v18 = vmul.f32 %v5698_v17, %v5694_v9  ;;  %5358 = vmatprep.subr.mxu0 %v5809_v41 }
 0x549   :  { %5351 = vmatmul.mubr.msk.f32.vlgmr.msra.gmra.mxu0 %vm330_vm3, %v588_v18 }
 0x54a   :  { %5360 = vmatprep.mubr.msk.f32.mxu0 %vm5810_vm2, %v5809_v41  ;;  %5359 = vmatpush3.msra.mxu0 %v6071_v19 }
 0x54b   :  { %5368 = vmatprep.subr.mxu0 %v5809_v41 }
 0x605   :  { %v494_v21 = vpop.f32.mrf.mxu0 }
 0x606   :  { %5361 = vmatmul.mubr.msk.f32.vlgmr.msra.gmra.mxu0 %vm330_vm3, %v494_v21 }
 0x607   :  { %v5342_v23 = vpop.f32.mrf.mxu0  ;;  %5370 = vmatprep.mubr.msk.f32.mxu0 %vm5810_vm2, %v5809_v41 }
 0x608   :  { %v1373_v23 = vsub.s32 1, %v6035_v50 }
 0x609   :  { %v661_v24 = vpop.f32.mrf.mxu0 }
 0x60a   :  { %5356 = vmatmul.mubr.msk.f32.vlgmr.msra.gmra.mxu1 %vm330_vm3, %v661_v24 }
 0x60b   :  { %5364 = vmatpush3.xpose.msk.msra.mxu1 %vm330_vm3, %v814_v22  ;;  %v5352_v25 = vpop.f32.mrf.mxu0  ;;  %5365 = vmatprep.mubr.msk.f32.mxu1 %vm5810_vm2, %v5809_v41  ;;  %v6159_v22 = vld [vmem:[%s6731_s8 + $0x18] sm:$0xff] }
 0x60c   :  { %5373 = vmatprep.subr.mxu1 %v5809_v41 }
 0x60e   :  { %5366 = vmatmul.mubr.msk.f32.vlgmr.msra.gmra.mxu1 %vm330_vm3, %v812_v26  ;;  %v6168_v26 = vrot.slane %v6041_v52, %v1373_v23 }
 0x60f   :  { %5375 = vmatprep.mubr.msk.f32.mxu1 %vm5810_vm2, %v5809_v41  ;;  %5374 = vmatpush3.msra.mxu1 %v6122_v61 }
 0x610   :  { %5383 = vmatprep.subr.mxu1 %v5809_v41 }
 0x6c6   :  { %v807_v27 = vpop.f32.mrf.mxu0 }
 0x6c8   :  { %v5362_v28 = vpop.f32.mrf.mxu0 }
 0x6ca   :  { %v734_v29 = vpop.f32.mrf.mxu1 }
 0x6cb   :  { %v6093_v30 = vadd.f32 %v807_v27, %v734_v29 }
 0x6cc   :  { %v5357_v31 = vpop.f32.mrf.mxu1 }
 0x6ce   :  { %v885_v32 = vpop.f32.mrf.mxu1 }
 0x6cf   :  { %v889_v36 = vmul.f32 0.35355338, %v885_v32 }
 0x6d0   :  { %v5367_v37 = vpop.f32.mrf.mxu1 }
 0x6d1   :  { %v890_v38 = vadd.f32 %v889_v36, %v6044_v53 }
 0x6d3   :  { %v891_v44 = vsel %vm330_vm3, %v890_v38, -inf }
 0x6d4   :  { %892 = vmax.xlane.f32.xlu1 %v891_v44 }
 0x6e5   :  { %1054 = vrot.lane.b32.xlu1 %v6015_v45, %s6751_s27 }
 0x6e9   :  { %1052 = vrot.lane.b32.xlu1 %v6015_v45, %s5819_s30 }
 0x6ed   :  { %1294 = vrot.lane.b32.xlu1 %v6103_v46, %s5812_s28 }
 0x75d   :  { %v893_v47 = vpop.xlane.xlu1 %892 }
 0x75e   :  { %v894_v48 = vsub.f32 %v890_v38, %v893_v47 }
 0x760   :  { %v895_v51 = vmul.f32 1.442695, %v894_v48 }
 0x761   :  { %v1055_v58 = vpop.permute.xlu1 %1054 }
 0x762   :  { %5699 = vpow2.f32 %v895_v51 }
 0x765   :  { %v1053_v60 = vpop.permute.xlu1 %1052 }
 0x769   :  { %v1295_v13 = vpop.permute.xlu1 %1294 }
 0x76f   :  { %v5700_v54 = vpop.eup %5699 }
 0x770   :  { %v897_v55 = vsel %vm330_vm3, %v5700_v54, 0.0 }
 0x771   :  { %898 = vadd.xlane.f32.xlu0 %v897_v55 }
 0x787   :  { %902 = vrot.lane.b32.xlu0 %v6015_v45, %s5820_s4 }
 0x7fa   :  { %v899_v56 = vpop.xlane.xlu0 %898 }
 0x7fb   :  { %5701 = vrcp.f32 %v899_v56 }
 0x7fe   :  { %v903_v57 = vpop.permute.xlu0 %902 }
 0x7ff   :  { %5369 = vmatpush3.msra.mxu0 %v903_v57 }
 0x800   :  { %5378 = vmatprep.subr.mxu0 %v5809_v41 }
 0x808   :  { %v5702_v42 = vpop.eup %5701 }
 0x809   :  { %v901_v59 = vmul.f32 %v5702_v42, %v5700_v54 }
 0x80b   :  { %5371 = vmatmul.mubr.msk.f32.vlgmr.msra.gmra.mxu0 %vm330_vm3, %v901_v59 }
 0x80c   :  { %5379 = vmatpush3.xpose.msk.msra.mxu0 %vm330_vm3, %v1055_v58  ;;  %5380 = vmatprep.mubr.msk.f32.mxu0 %vm5810_vm2, %v5809_v41 }
 0x80d   :  { %5388 = vmatprep.subr.mxu0 %v5809_v41 }
 0x80f   :  { %5381 = vmatmul.mubr.msk.f32.vlgmr.msra.gmra.mxu0 %vm330_vm3, %v1053_v60 }
 0x810   :  { %5390 = vmatprep.mubr.msk.f32.mxu0 %vm5810_vm2, %v5809_v41  ;;  %5389 = vmatpush3.msra.mxu0 %v6159_v22 }
 0x811   :  { %5398 = vmatprep.subr.mxu0 %v5809_v41 }
 0x8cb   :  { %v974_v62 = vpop.f32.mrf.mxu0 }
 0x8cc   :  { %5376 = vmatmul.mubr.msk.f32.vlgmr.msra.gmra.mxu1 %vm330_vm3, %v974_v62 }
 0x8cd   :  { %v5372_v63 = vpop.f32.mrf.mxu0  ;;  %5385 = vmatprep.mubr.msk.f32.mxu1 %vm5810_vm2, %v5809_v41 }
 0x8cf   :  { %v1126_v0 = vpop.f32.mrf.mxu0 }
 0x8d0   :  { %v1130_v1 = vmul.f32 0.35355338, %v1126_v0 }
 0x8d1   :  { %v5382_v2 = vpop.f32.mrf.mxu0 }
 0x8d2   :  { %v1131_v3 = vadd.f32 %v1130_v1, %v6044_v53 }
 0x8d4   :  { %v1132_v4 = vsel %vm330_vm3, %v1131_v3, -inf }
 0x8d5   :  { %1133 = vmax.xlane.f32.xlu0 %v1132_v4 }
 0x8eb   :  { %1143 = vrot.lane.b32.xlu0 %v6015_v45, %s6749_s25 }
 0x8ef   :  { %1465 = vrot.lane.b32.xlu0 %v6103_v46, %s5811_s3 }
 0x95e   :  { %v1134_v5 = vpop.xlane.xlu0 %1133 }
 0x95f   :  { %v1135_v6 = vsub.f32 %v1131_v3, %v1134_v5 }
 0x961   :  { %v1136_v7 = vmul.f32 1.442695, %v1135_v6 }
 0x962   :  { %v1144_v8 = vpop.permute.xlu0 %1143 }
 0x963   :  { %5703 = vpow2.f32 %v1136_v7  ;;  %5384 = vmatpush3.msra.mxu1 %v1144_v8 }
 0x964   :  { %5393 = vmatprep.subr.mxu1 %v5809_v41 }
 0x966   :  { %v1466_v18 = vpop.permute.xlu0 %1465 }
 0x970   :  { %v5704_v9 = vpop.eup %5703 }
 0x971   :  { %v1138_v10 = vsel %vm330_vm3, %v5704_v9, 0.0 }
 0x972   :  { %1139 = vadd.xlane.f32.xlu1 %v1138_v10 }
 0x983   :  { %1463 = vrot.lane.b32.xlu1 %v6103_v46, %s5813_s29 }
 0x98c   :  { %v1047_v11 = vpop.f32.mrf.mxu1 }
 0x98d   :  { %v1051_v45 = vadd.f32 %v1047_v11, %v6093_v30 }
 0x98e   :  { %v5377_v12 = vpop.f32.mrf.mxu1 }
 0x9fb   :  { %v1140_v14 = vpop.xlane.xlu1 %1139 }
 0x9fc   :  { %5705 = vrcp.f32 %v1140_v14 }
 0x9ff   :  { %v1464_v21 = vpop.permute.xlu1 %1463 }
 0xa09   :  { %v5706_v15 = vpop.eup %5705 }
 0xa0a   :  { %v1142_v17 = vmul.f32 %v5706_v15, %v5704_v9 }
 0xa0c   :  { %5386 = vmatmul.mubr.msk.f32.vlgmr.msra.gmra.mxu1 %vm330_vm3, %v1142_v17 }
 0xa0d   :  { %5394 = vmatpush3.xpose.msk.msra.mxu1 %vm330_vm3, %v1295_v13  ;;  %5395 = vmatprep.mubr.msk.f32.mxu1 %vm5810_vm2, %v5809_v41 }
 0xa0e   :  { %5403 = vmatprep.subr.mxu1 %v5809_v41 }
 0xa10   :  { %5396 = vmatmul.mubr.msk.f32.vlgmr.msra.gmra.mxu1 %vm330_vm3, %v6103_v46 }
 0xa11   :  { %5404 = vmatpush3.xpose.msk.msra.mxu1 %vm330_vm3, %v1466_v18  ;;  %5405 = vmatprep.mubr.msk.f32.mxu1 %vm5810_vm2, %v5809_v41 }
 0xa12   :  { %5413 = vmatprep.subr.mxu1 %v5809_v41 }
 0xa14   :  { %5406 = vmatmul.mubr.msk.f32.vlgmr.msra.gmra.mxu1 %vm330_vm3, %v1464_v21 }
 0xa15   :  { %5414 = vmatpush3.msra.mxu1 %v6077_v20  ;;  %5415 = vmatprep.mubr.msk.f32.mxu1 %vm5810_vm2, %v5809_v41 }
 0xa16   :  { %5423 = vmatprep.subr.mxu1 %v5809_v41 }
 0xacc   :  { %v1215_v24 = vpop.f32.mrf.mxu1 }
 0xacd   :  { %5391 = vmatmul.mubr.msk.f32.vlgmr.msra.gmra.mxu0 %vm330_vm3, %v1215_v24 }
 0xace   :  { %v5387_v25 = vpop.f32.mrf.mxu1  ;;  %5400 = vmatprep.mubr.msk.f32.mxu0 %vm5810_vm2, %v5809_v41 }
 0xad0   :  { %v1366_v27 = vpop.f32.mrf.mxu1 }
 0xad1   :  { %v1370_v28 = vmul.f32 0.35355338, %v1366_v27 }
 0xad2   :  { %v5397_v29 = vpop.f32.mrf.mxu1 }
 0xad3   :  { %v1375_v30 = vadd.f32 %v6168_v26, %v1370_v28 }
 0xad4   :  { %v1537_v31 = vpop.f32.mrf.mxu1 }
 0xad5   :  { %v1541_v32 = vmul.f32 0.35355338, %v1537_v31  ;;  %v1376_v36 = vsel %vm330_vm3, %v1375_v30, -inf }
 0xad6   :  { %1377 = vmax.xlane.f32.xlu0 %v1376_v36  ;;  %v5407_v37 = vpop.f32.mrf.mxu1 }
 0xad7   :  { %v1542_v38 = vadd.f32 %v1541_v32, %v6168_v26 }
 0xad9   :  { %v1543_v44 = vsel %vm330_vm3, %v1542_v38, -inf }
 0xada   :  { %1544 = vmax.xlane.f32.xlu1 %v1543_v44 }
 0xaeb   :  { %1554 = vrot.lane.b32.xlu1 %v6103_v46, %s5817_s24 }
 0xaef   :  { %1778 = vrot.lane.b32.xlu1 %v6103_v46, %s5815_s1 }
 0xaf3   :  { %1776 = vrot.lane.b32.xlu1 %v6103_v46, %s5816_s5 }
 0xb5f   :  { %v1378_v52 = vpop.xlane.xlu0 %1377 }
 0xb60   :  { %v1379_v47 = vsub.f32 %v1375_v30, %v1378_v52 }
 0xb62   :  { %v1380_v48 = vmul.f32 1.442695, %v1379_v47 }
 0xb63   :  { %v1545_v51 = vpop.xlane.xlu1 %1544 }
 0xb64   :  { %5707 = vpow2.f32 %v1380_v48  ;;  %v1546_v54 = vsub.f32 %v1542_v38, %v1545_v51  ;;  %v6232_v48 = vld [vmem:[%s6732_s9] ss:$0 sm:$0xff] }
 0xb66   :  { %v1547_v55 = vmul.f32 1.442695, %v1546_v54 }
 0xb67   :  { %v1555_v4 = vpop.permute.xlu1 %1554 }
 0xb68   :  { %5709 = vpow2.f32 %v1547_v55 }
 0xb6b   :  { %v1779_v8 = vpop.permute.xlu1 %1778 }
 0xb71   :  { %v5708_v56 = vpop.eup %5707 }
 0xb72   :  { %v1382_v57 = vsel %vm330_vm3, %v5708_v56, 0.0 }
 0xb73   :  { %1383 = vadd.xlane.f32.xlu0 %v1382_v57 }
 0xb75   :  { %v5710_v42 = vpop.eup %5709 }
 0xb76   :  { %v1549_v58 = vsel %vm330_vm3, %v5710_v42, 0.0 }
 0xb77   :  { %1550 = vadd.xlane.f32.xlu0 %v1549_v58 }
 0xb8d   :  { %1387 = vrot.lane.b32.xlu0 %v6103_v46, %s5814_s23  ;;  %v1288_v59 = vpop.f32.mrf.mxu0 }
 0xb8e   :  { %v6184_v60 = vadd.f32 %v1288_v59, %v1051_v45  ;;  %v1777_v45 = vpop.permute.xlu1 %1776 }
 0xb8f   :  { %v5392_v62 = vpop.f32.mrf.mxu0 }
 0xb90   :  { %v2264_v55 = vadd.f32 %v6232_v48, %v6184_v60 }
 0xb92   :  { %v2266_v59 = vadd.f32 %v2264_v55, %v5993_v39  ;;  %v6290_v55 = vld [vmem:[%s6735_s12] sm:$0xff] }
 0xb94   :  { %v2268_v62 = vsel %vm245_vm1, %v2266_v59, 0.0 }
 0xbfc   :  { %v1384_v63 = vpop.xlane.xlu0 %1383 }
 0xbfd   :  { %5711 = vrcp.f32 %v1384_v63 }
 0xc00   :  { %v1551_v0 = vpop.xlane.xlu0 %1550 }
 0xc01   :  { %5713 = vrcp.f32 %v1551_v0 }
 0xc04   :  { %v1388_v1 = vpop.permute.xlu0 %1387 }
 0xc05   :  { %5399 = vmatpush3.msra.mxu0 %v1388_v1 }
 0xc06   :  { %5408 = vmatprep.subr.mxu0 %v5809_v41 }
 0xc0a   :  { %v5712_v2 = vpop.eup %5711 }
 0xc0b   :  { %v1386_v3 = vmul.f32 %v5712_v2, %v5708_v56 }
 0xc0d   :  { %5401 = vmatmul.mubr.msk.f32.vlgmr.msra.gmra.mxu0 %vm330_vm3, %v1386_v3 }
 0xc0e   :  { %v5714_v5 = vpop.eup %5713  ;;  %5409 = vmatpush3.msra.mxu0 %v1555_v4  ;;  %5410 = vmatprep.mubr.msk.f32.mxu0 %vm5810_vm2, %v5809_v41 }
 0xc0f   :  { %v1553_v6 = vmul.f32 %v5714_v5, %v5710_v42  ;;  %5418 = vmatprep.subr.mxu0 %v5809_v41 }
 0xc11   :  { %5411 = vmatmul.mubr.msk.f32.vlgmr.msra.gmra.mxu0 %vm330_vm3, %v1553_v6 }
 0xc12   :  { %5419 = vmatpush3.msra.mxu0 %v6071_v19  ;;  %5420 = vmatprep.mubr.msk.f32.mxu0 %vm5810_vm2, %v5809_v41 }
 0xc13   :  { %5428 = vmatprep.subr.mxu0 %v5809_v41 }
 0xccd   :  { %v1459_v7 = vpop.f32.mrf.mxu0 }
 0xcce   :  { %5421 = vmatmul.mubr.msk.f32.vlgmr.msra.gmra.mxu0 %vm330_vm3, %v1459_v7 }
 0xccf   :  { %v5402_v9 = vpop.f32.mrf.mxu0  ;;  %5430 = vmatprep.mubr.msk.f32.mxu0 %vm5810_vm2, %v5809_v41 }
 0xcd1   :  { %v1626_v10 = vpop.f32.mrf.mxu0 }
 0xcd2   :  { %5416 = vmatmul.mubr.msk.f32.vlgmr.msra.gmra.mxu1 %vm330_vm3, %v1626_v10 }
 0xcd3   :  { %5424 = vmatpush3.xpose.msk.msra.mxu1 %vm330_vm3, %v1779_v8  ;;  %v5412_v11 = vpop.f32.mrf.mxu0  ;;  %5425 = vmatprep.mubr.msk.f32.mxu1 %vm5810_vm2, %v5809_v41 }
 0xcd4   :  { %5433 = vmatprep.subr.mxu1 %v5809_v41 }
 0xcd6   :  { %5426 = vmatmul.mubr.msk.f32.vlgmr.msra.gmra.mxu1 %vm330_vm3, %v1777_v45 }
 0xcd7   :  { %5434 = vmatpush3.msra.mxu1 %v6122_v61  ;;  %5435 = vmatprep.mubr.msk.f32.mxu1 %vm5810_vm2, %v5809_v41 }
 0xcd8   :  { %5443 = vmatprep.subr.mxu1 %v5809_v41 }
 0xd8e   :  { %v1772_v12 = vpop.f32.mrf.mxu0 }
 0xd90   :  { %v5422_v13 = vpop.f32.mrf.mxu0 }
 0xd92   :  { %v1699_v14 = vpop.f32.mrf.mxu1 }
 0xd93   :  { %v1773_v15 = vadd.f32 %v1772_v12, %v1699_v14 }
 0xd94   :  { %v5417_v17 = vpop.f32.mrf.mxu1 }
 0xd96   :  { %v1850_v18 = vpop.f32.mrf.mxu1 }
 0xd97   :  { %v1854_v21 = vmul.f32 0.35355338, %v1850_v18 }
 0xd98   :  { %v5427_v23 = vpop.f32.mrf.mxu1 }
 0xd99   :  { %v1855_v24 = vadd.f32 %v1854_v21, %v6168_v26 }
 0xd9b   :  { %v1856_v25 = vsel %vm330_vm3, %v1855_v24, -inf }
 0xd9c   :  { %1857 = vmax.xlane.f32.xlu0 %v1856_v25 }
 0xdb2   :  { %1867 = vrot.lane.b32.xlu0 %v6103_v46, %s5820_s4 }
 0xdb6   :  { %2017 = vrot.lane.b32.xlu0 %v6103_v46, %s5819_s30 }
 0xe25   :  { %v1858_v27 = vpop.xlane.xlu0 %1857 }
 0xe26   :  { %v1859_v28 = vsub.f32 %v1855_v24, %v1858_v27 }
 0xe28   :  { %v1860_v29 = vmul.f32 1.442695, %v1859_v28 }
 0xe29   :  { %v1868_v30 = vpop.permute.xlu0 %1867 }
 0xe2a   :  { %5715 = vpow2.f32 %v1860_v29  ;;  %5429 = vmatpush3.msra.mxu0 %v1868_v30 }
 0xe2b   :  { %5438 = vmatprep.subr.mxu0 %v5809_v41 }
 0xe2d   :  { %v2018_v52 = vpop.permute.xlu0 %2017 }
 0xe37   :  { %v5716_v31 = vpop.eup %5715 }
 0xe38   :  { %v1862_v32 = vsel %vm330_vm3, %v5716_v31, 0.0 }
 0xe39   :  { %1863 = vadd.xlane.f32.xlu1 %v1862_v32 }
 0xe4a   :  { %2019 = vrot.lane.b32.xlu1 %v6103_v46, %s6751_s27 }
 0xec2   :  { %v1864_v36 = vpop.xlane.xlu1 %1863 }
 0xec3   :  { %5717 = vrcp.f32 %v1864_v36 }
 0xec6   :  { %v2020_v44 = vpop.permute.xlu1 %2019 }
 0xed0   :  { %v5718_v37 = vpop.eup %5717 }
 0xed1   :  { %v1866_v38 = vmul.f32 %v5718_v37, %v5716_v31 }
 0xed3   :  { %5431 = vmatmul.mubr.msk.f32.vlgmr.msra.gmra.mxu0 %vm330_vm3, %v1866_v38  ;;  %v6260_v38 = vld [vmem:[%s6734_s11] ss:$0 sm:$0xff]  ;;  %s6768_s11 = smov 40  }
 0xed4   :  { %5439 = vmatpush3.xpose.msk.msra.mxu0 %vm330_vm3, %v2020_v44  ;;  %5440 = vmatprep.mubr.msk.f32.mxu0 %vm5810_vm2, %v5809_v41 }
 0xed5   :  { %5448 = vmatprep.subr.mxu0 %v5809_v41 }
 0xed7   :  { %5441 = vmatmul.mubr.msk.f32.vlgmr.msra.gmra.mxu0 %vm330_vm3, %v2018_v52 }
 0xed8   :  { %5449 = vmatpush3.msra.mxu0 %v6159_v22  ;;  %5450 = vmatprep.mubr.msk.f32.mxu0 %vm5810_vm2, %v5809_v41 }
 0xf93   :  { %v1939_v47 = vpop.f32.mrf.mxu0 }
 0xf94   :  { %5436 = vmatmul.mubr.msk.f32.vlgmr.msra.gmra.mxu1 %vm330_vm3, %v1939_v47  ;;  %v6271_v47 = vld [vmem:[%s6735_s12 + $0x18] sm:$0xff] }
 0xf95   :  { %v5432_v51 = vpop.f32.mrf.mxu0  ;;  %5445 = vmatprep.mubr.msk.f32.mxu1 %vm5810_vm2, %v5809_v41 }
 0xf96   :  { %v6278_v51 = vld [vmem:[%s6735_s12 + $0x10] sm:$0xff] }
 0xf97   :  { %v2091_v54 = vpop.f32.mrf.mxu0 }
 0xf98   :  { %v2095_v56 = vmul.f32 0.35355338, %v2091_v54  ;;  %v6283_v54 = vld [vmem:[%s6735_s12 + $0x8] sm:$0xff] }
 0xf99   :  { %v5442_v57 = vpop.f32.mrf.mxu0 }
 0xf9a   :  { %v2096_v42 = vadd.f32 %v2095_v56, %v6168_v26 }
 0xf9c   :  { %v2097_v58 = vsel %vm330_vm3, %v2096_v42, -inf }
 0xf9d   :  { %2098 = vmax.xlane.f32.xlu1 %v2097_v58 }
 0xfa1   :  { %2269 = vadd.xlane.f32.xlu1 %v2268_v62 }
0x1026   :  { %v2099_v63 = vpop.xlane.xlu1 %2098 }
0x1027   :  { %v2100_v0 = vsub.f32 %v2096_v42, %v2099_v63 }
0x1029   :  { %v2101_v1 = vmul.f32 1.442695, %v2100_v0  ;;  %v6314_v0 = vld [vmem:[%s6737_s14 + $0x38] sm:$0xff] }
0x102a   :  { %v2270_v11 = vpop.xlane.xlu1 %2269  ;;  %5464 = vmatprep.subr.mxu0 %v6314_v0 }
0x102b   :  { %5719 = vpow2.f32 %v2101_v1  ;;  %v2275_v45 = vmul.f32 0.03125, %v2270_v11  ;;  %v6347_v1 = vld [vmem:[%s6737_s14 + $0x10] sm:$0xff] }
0x102d   :  { %v2277_v14 = vsub.f32 %v2266_v59, %v2275_v45 }
0x102f   :  { %v2279_v21 = vmul.f32 %v2277_v14, %v2277_v14 }
0x1031   :  { %v2281_v23 = vsel %vm245_vm1, %v2279_v21, 0.0 }
0x1038   :  { %v5720_v2 = vpop.eup %5719 }
0x1039   :  { %v2103_v3 = vsel %vm330_vm3, %v5720_v2, 0.0 }
0x103a   :  { %2104 = vadd.xlane.f32.xlu0 %v2103_v3  ;;  %v6361_v3 = vld [vmem:[%s6737_s14] sm:$0xff] }
0x1050   :  { %2108 = vrot.lane.b32.xlu0 %v6103_v46, %s6749_s25 }
0x1054   :  { %v2012_v60 = vpop.f32.mrf.mxu1 }
0x1055   :  { %v2016_v4 = vadd.f32 %v2012_v60, %v1773_v15  ;;  %v6371_v60 = vld [vmem:[%s6736_s13] ss:$0 sm:$0xff] }
0x1056   :  { %v5437_v5 = vpop.f32.mrf.mxu1 }
0x10c3   :  { %v2105_v6 = vpop.xlane.xlu0 %2104 }
0x10c4   :  { %5721 = vrcp.f32 %v2105_v6 }
0x10c7   :  { %v2109_v39 = vpop.permute.xlu0 %2108 }
0x10c8   :  { %5444 = vmatpush3.msra.mxu1 %v2109_v39 }
0x10c9   :  { %5453 = vmatprep.subr.mxu1 %v6271_v47 }
0x10d1   :  { %v5722_v7 = vpop.eup %5721 }
0x10d2   :  { %v2107_v8 = vmul.f32 %v5722_v7, %v5720_v2  ;;  %v6354_v2 = vld [vmem:[%s6737_s14 + $0x8] sm:$0xff] }
0x10d4   :  { %5446 = vmatmul.mubr.msk.f32.vlgmr.msra.gmra.mxu1 %vm330_vm3, %v2107_v8 }
0x10d5   :  { %5454 = vmatpush3.msra.mxu1 %v6271_v47 }
0x10d6   :  { %5455 = vmatprep.subr.mxu1 %v6278_v51 }
0x10d7   :  { %5456 = vmatpush3.msra.mxu1 %v6278_v51 }
0x10d8   :  { %5457 = vmatprep.subr.mxu1 %v6283_v54 }
0x10d9   :  { %5458 = vmatpush3.msra.mxu1 %v6283_v54 }
0x10da   :  { %5459 = vmatprep.subr.mxu1 %v6290_v55 }
0x10db   :  { %5460 = vmatpush3.msra.mxu1 %v6290_v55 }
0x10dc   :  { %5483 = vmatprep.subr.mxu1 %v5957_v16 }
0x1194   :  { %v2180_v9 = vpop.f32.mrf.mxu1 }
0x1195   :  { %5451 = vmatmul.mubr.msk.f32.vlgmr.msra.gmra.mxu0 %vm330_vm3, %v2180_v9 }
0x1196   :  { %v5447_v10 = vpop.f32.mrf.mxu1  ;;  %5465 = vmatpush3.msra.mxu0 %v6314_v0 }
0x1255   :  { %v2253_v12 = vpop.f32.mrf.mxu0 }
0x1256   :  { %v2257_v13 = vadd.f32 %v2253_v12, %v2016_v4 }
0x1257   :  { %v5452_v46 = vpop.f32.mrf.mxu0 }
0x1258   :  { %v2265_v15 = vadd.f32 %v6232_v48, %v2257_v13 }
0x125a   :  { %v2267_v17 = vadd.f32 %v2265_v15, %v5995_v40  ;;  %v6255_v40 = vld [vmem:[%s6733_s10] ss:$0 sm:$0xff] }
0x125c   :  { %v2271_v18 = vsel %vm245_vm1, %v2267_v17, 0.0 }
0x125d   :  { %2272 = vadd.xlane.f32.xlu1 %v2271_v18 }
0x1261   :  { %2282 = vadd.xlane.f32.xlu1 %v2281_v23 }
0x12e6   :  { %v2273_v24 = vpop.xlane.xlu1 %2272 }
0x12e7   :  { %v2276_v25 = vmul.f32 0.03125, %v2273_v24 }
0x12e9   :  { %v2278_v27 = vsub.f32 %v2267_v17, %v2276_v25 }
0x12ea   :  { %v2283_v28 = vpop.xlane.xlu1 %2282 }
0x12eb   :  { %v2287_v29 = vmul.f32 0.03125, %v2283_v28  ;;  %v2280_v30 = vmul.f32 %v2278_v27, %v2278_v27  ;;  %v6382_v28 = vld [vmem:[%s6738_s15] ss:$0 sm:$0xff] }
0x12ed   :  { %v2289_v31 = vadd.f32 1e-12, %v2287_v29  ;;  %v2284_v32 = vsel %vm245_vm1, %v2280_v30, 0.0 }
0x12ee   :  { %2285 = vadd.xlane.f32.xlu1 %v2284_v32 }
0x12ef   :  { %5723 = vrsqrt.f32 %v2289_v31 }
0x12fc   :  { %v5724_v36 = vpop.eup %5723 }
0x12fd   :  { %v2293_v37 = vmul.f32 %v5724_v36, %v2277_v14 }
0x12ff   :  { %v2301_v44 = vmul.f32 %v6255_v40, %v2293_v37 }
0x1301   :  { %v6264_v52 = vadd.f32 %v6260_v38, %v2301_v44 }
0x1303   :  { %5461 = vmatprep.mubr.msk.f32.mxu1 %vm245_vm1, %v6264_v52 }
0x1377   :  { %v2286_v56 = vpop.xlane.xlu1 %2285 }
0x1378   :  { %v2288_v57 = vmul.f32 0.03125, %v2286_v56 }
0x137a   :  { %v2290_v42 = vadd.f32 1e-12, %v2288_v57 }
0x137c   :  { %5725 = vrsqrt.f32 %v2290_v42 }
0x1389   :  { %v5726_v58 = vpop.eup %5725 }
0x138a   :  { %v2294_v59 = vmul.f32 %v5726_v58, %v2278_v27 }
0x138c   :  { %v2302_v62 = vmul.f32 %v6255_v40, %v2294_v59 }
0x138e   :  { %v6299_v63 = vadd.f32 %v6260_v38, %v2302_v62 }
0x1390   :  { %5462 = vmatmul.mubr.msk.f32.vlgmr.msra.gmra.mxu1 %vm245_vm1, %v6299_v63 }
0x1391   :  { %5484 = vmatpush3.msra.mxu1 %v5957_v16  ;;  %v6319_v16 = vld [vmem:[%s6737_s14 + $0x30] sm:$0xff] }
0x1392   :  { %5485 = vmatprep.subr.mxu1 %v5972_v33  ;;  %5466 = vmatprep.subr.mxu0 %v6319_v16 }
0x1393   :  { %5486 = vmatpush3.msra.mxu1 %v5972_v33  ;;  %v6326_v33 = vld [vmem:[%s6737_s14 + $0x28] sm:$0xff]  ;;  %5467 = vmatpush3.msra.mxu0 %v6319_v16 }
0x1394   :  { %5487 = vmatprep.subr.mxu1 %v5979_v34  ;;  %5468 = vmatprep.subr.mxu0 %v6326_v33 }
0x1395   :  { %5488 = vmatpush3.msra.mxu1 %v5979_v34  ;;  %v6333_v34 = vld [vmem:[%s6737_s14 + $0x20] sm:$0xff]  ;;  %5469 = vmatpush3.msra.mxu0 %v6326_v33 }
0x1396   :  { %5489 = vmatprep.subr.mxu1 %v5986_v35  ;;  %5470 = vmatprep.subr.mxu0 %v6333_v34 }
0x1397   :  { %5490 = vmatpush3.msra.mxu1 %v5986_v35  ;;  %v6340_v35 = vld [vmem:[%s6737_s14 + $0x18] sm:$0xff]  ;;  %5471 = vmatpush3.msra.mxu0 %v6333_v34 }
0x1398   :  { %5494 = vmatprep.subr.mxu1 %v5809_v41  ;;  %5472 = vmatprep.subr.mxu0 %v6340_v35 }
0x1399   :  { %5473 = vmatpush3.msra.mxu0 %v6340_v35 }
0x139a   :  { %5474 = vmatprep.subr.mxu0 %v6347_v1 }
0x139b   :  { %5475 = vmatpush3.msra.mxu0 %v6347_v1 }
0x139c   :  { %5476 = vmatprep.subr.mxu0 %v6354_v2 }
0x139d   :  { %5477 = vmatpush3.msra.mxu0 %v6354_v2 }
0x139e   :  { %5478 = vmatprep.subr.mxu0 %v6361_v3 }
0x139f   :  { %5479 = vmatpush3.msra.mxu0 %v6361_v3 }
0x13a0   :  { %5499 = vmatprep.subr.mxu0 %v5809_v41 }
0x1450   :  { %v5463_v4 = vpop.f32.mrf.mxu1 }
0x1451   :  { %v2395_v5 = vadd.f32 %v5463_v4, %v6371_v60 }
0x1452   :  { %v2389_v6 = vpop.f32.mrf.mxu1 }
0x1453   :  { %v2401_v39 = vmul.f32 0.044715, %v2395_v5  ;;  %v2390_v7 = vadd.f32 %v6371_v60, %v2389_v6  ;;  %v2399_v24 = vmul.f32 0.5, %v2395_v5 }
0x1455   :  { %v2403_v8 = vmul.f32 %v2401_v39, %v2395_v5  ;;  %v2400_v9 = vmul.f32 0.044715, %v2390_v7  ;;  %v2398_v21 = vmul.f32 0.5, %v2390_v7 }
0x1457   :  { %v2405_v10 = vmul.f32 %v2403_v8, %v2395_v5  ;;  %v2402_v11 = vmul.f32 %v2400_v9, %v2390_v7 }
0x1459   :  { %v2407_v45 = vadd.f32 %v2405_v10, %v2395_v5  ;;  %v2404_v12 = vmul.f32 %v2402_v11, %v2390_v7 }
0x145b   :  { %v2409_v13 = vmul.f32 0.7978846, %v2407_v45  ;;  %v2406_v46 = vadd.f32 %v2404_v12, %v2390_v7  ;;  %v6395_v12 = vld [vmem:[%s6739_s16] ss:$0 sm:$0xff]  ;;  %s6767_s16 = smov 72  }
0x145d   :  { %5727 = vtanh.f32 %v2409_v13  ;;  %v2408_v14 = vmul.f32 0.7978846, %v2406_v46  ;;  %v6400_v46 = vld [vmem:[%s6740_s17] ss:$0 sm:$0xff] }
0x145f   :  { %5729 = vtanh.f32 %v2408_v14 }
0x146a   :  { %v5728_v15 = vpop.eup %5727 }
0x146b   :  { %v2413_v18 = vadd.f32 1.0, %v5728_v15 }
0x146c   :  { %v5730_v17 = vpop.eup %5729 }
0x146d   :  { %v2412_v23 = vadd.f32 1.0, %v5730_v17  ;;  %v2415_v27 = vmul.f32 %v2413_v18, %v2399_v24 }
0x146f   :  { %v2414_v25 = vmul.f32 %v2412_v23, %v2398_v21 }
0x1471   :  { %5480 = vmatprep.mubr.msk.f32.mxu0 %vm2422_vm4, %v2414_v25 }
0x1472   :  { %5481 = vmatmul.mubr.msk.f32.vlgmr.msra.gmra.mxu0 %vm2422_vm4, %v2415_v27 }
0x1473   :  { %5501 = vmatprep.mubr.msk.f32.mxu0 %vm5810_vm2, %v5809_v41 }
0x1532   :  { %v5482_v29 = vpop.f32.mrf.mxu0 }
0x1533   :  { %v2501_v30 = vadd.f32 %v5482_v29, %v6382_v28 }
0x1534   :  { %v2495_v31 = vpop.f32.mrf.mxu0 }
0x1535   :  { %v2496_v32 = vadd.f32 %v6382_v28, %v2495_v31  ;;  %v2505_v36 = vadd.f32 %v2501_v30, %v6299_v63 }
0x1537   :  { %v2509_v37 = vsel %vm245_vm1, %v2505_v36, 0.0  ;;  %v2504_v44 = vadd.f32 %v2496_v32, %v6264_v52 }
0x1538   :  { %2510 = vadd.xlane.f32.xlu0 %v2509_v37 }
0x1539   :  { %v2506_v56 = vsel %vm245_vm1, %v2504_v44, 0.0 }
0x153a   :  { %2507 = vadd.xlane.f32.xlu1 %v2506_v56 }
0x15c1   :  { %v2511_v57 = vpop.xlane.xlu0 %2510 }
0x15c2   :  { %v2513_v42 = vmul.f32 0.03125, %v2511_v57 }
0x15c3   :  { %v2508_v58 = vpop.xlane.xlu1 %2507 }
0x15c4   :  { %v2512_v59 = vmul.f32 0.03125, %v2508_v58  ;;  %v2515_v62 = vsub.f32 %v2505_v36, %v2513_v42 }
0x15c6   :  { %v2514_v4 = vsub.f32 %v2504_v44, %v2512_v59  ;;  %v2517_v39 = vmul.f32 %v2515_v62, %v2515_v62 }
0x15c8   :  { %v2516_v5 = vmul.f32 %v2514_v4, %v2514_v4  ;;  %v2521_v63 = vsel %vm245_vm1, %v2517_v39, 0.0 }
0x15ca   :  { %v2518_v6 = vsel %vm245_vm1, %v2516_v5, 0.0 }
0x15cb   :  { %2519 = vadd.xlane.f32.xlu1 %v2518_v6 }
0x15cf   :  { %2522 = vadd.xlane.f32.xlu1 %v2521_v63 }
0x1654   :  { %v2520_v7 = vpop.xlane.xlu1 %2519 }
0x1655   :  { %v2524_v52 = vmul.f32 0.03125, %v2520_v7 }
0x1657   :  { %v2526_v8 = vadd.f32 1e-12, %v2524_v52 }
0x1658   :  { %v2523_v9 = vpop.xlane.xlu1 %2522 }
0x1659   :  { %5731 = vrsqrt.f32 %v2526_v8  ;;  %v2525_v10 = vmul.f32 0.03125, %v2523_v9 }
0x165b   :  { %v2527_v11 = vadd.f32 1e-12, %v2525_v10 }
0x165d   :  { %5733 = vrsqrt.f32 %v2527_v11 }
0x1666   :  { %v5732_v45 = vpop.eup %5731 }
0x1667   :  { %v2530_v13 = vmul.f32 %v5732_v45, %v2514_v4 }
0x1669   :  { %v2538_v14 = vmul.f32 %v6395_v12, %v2530_v13 }
0x166a   :  { %v5734_v15 = vpop.eup %5733 }
0x166b   :  { %v2531_v17 = vmul.f32 %v5734_v15, %v2515_v62  ;;  %v6404_v18 = vadd.f32 %v6400_v46, %v2538_v14 }
0x166d   :  { %5491 = vmatprep.mubr.msk.f32.mxu1 %vm245_vm1, %v6404_v18  ;;  %v2539_v21 = vmul.f32 %v6395_v12, %v2531_v17 }
0x166f   :  { %v6410_v23 = vadd.f32 %v6400_v46, %v2539_v21 }
0x1671   :  { %5492 = vmatmul.mubr.msk.f32.vlgmr.msra.gmra.mxu1 %vm245_vm1, %v6410_v23 }
0x1672   :  { %5496 = vmatprep.mubr.msk.f32.mxu1 %vm5810_vm2, %v5809_v41 }
0x1731   :  { %v6416_v24 = vpop.f32.mrf.mxu1 }
0x1733   :  { %v2620_v25 = vpop.f32.mrf.mxu1 }
0x1734   :  { %v6419_v27 = vadd.f32 %v6012_v43, %v2620_v25 }
0x1736   :  { %2795 = vrot.lane.b32.xlu0 %v6419_v27, %s5813_s29  ;;  %2630 = vrot.lane.b32.xlu1 %v6419_v27, %s5812_s28 }
0x173a   :  { %2797 = vrot.lane.b32.xlu1 %v6419_v27, %s5811_s3 }
0x17a8   :  { %v2631_v29 = vpop.permute.xlu1 %2630  ;;  %v2796_v43 = vpop.permute.xlu0 %2795 }
0x17a9   :  { %5495 = vmatpush3.xpose.msk.msra.mxu1 %vm330_vm3, %v2631_v29 }
0x17aa   :  { %5504 = vmatprep.subr.mxu1 %v5809_v41 }
0x17ac   :  { %5497 = vmatmul.mubr.msk.f32.vlgmr.msra.gmra.mxu1 %vm330_vm3, %v6419_v27  ;;  %v2798_v30 = vpop.permute.xlu1 %2797 }
0x17ad   :  { %5505 = vmatpush3.xpose.msk.msra.mxu1 %vm330_vm3, %v2798_v30  ;;  %5506 = vmatprep.mubr.msk.f32.mxu1 %vm5810_vm2, %v5809_v41 }
0x17ae   :  { %5514 = vmatprep.subr.mxu1 %v5809_v41 }
0x17b0   :  { %5507 = vmatmul.mubr.msk.f32.vlgmr.msra.gmra.mxu1 %vm330_vm3, %v2796_v43 }
0x17b1   :  { %5515 = vmatpush3.msra.mxu1 %v6077_v20  ;;  %5516 = vmatprep.mubr.msk.f32.mxu1 %vm5810_vm2, %v5809_v41 }
0x17b2   :  { %5524 = vmatprep.subr.mxu1 %v5809_v41 }
0x186c   :  { %v2702_v31 = vpop.f32.mrf.mxu1 }
0x186d   :  { %v2706_v32 = vmul.f32 0.35355338, %v2702_v31 }
0x186e   :  { %v5498_v36 = vpop.f32.mrf.mxu1 }
0x186f   :  { %v2707_v37 = vadd.f32 %v2706_v32, %v6044_v53 }
0x1870   :  { %v2869_v44 = vpop.f32.mrf.mxu1 }
0x1871   :  { %v2873_v56 = vmul.f32 0.35355338, %v2869_v44  ;;  %v2708_v57 = vsel %vm330_vm3, %v2707_v37, -inf }
0x1872   :  { %2709 = vmax.xlane.f32.xlu1 %v2708_v57  ;;  %v5508_v42 = vpop.f32.mrf.mxu1 }
0x1873   :  { %v2874_v58 = vadd.f32 %v2873_v56, %v6044_v53 }
0x1875   :  { %v2875_v20 = vsel %vm330_vm3, %v2874_v58, -inf }
0x1876   :  { %2876 = vmax.xlane.f32.xlu0 %v2875_v20 }
0x188c   :  { %2886 = vrot.lane.b32.xlu0 %v6419_v27, %s5817_s24 }
0x18fb   :  { %v2710_v59 = vpop.xlane.xlu1 %2709 }
0x18fc   :  { %v2711_v62 = vsub.f32 %v2707_v37, %v2710_v59 }
0x18fe   :  { %v2712_v4 = vmul.f32 1.442695, %v2711_v62 }
0x18ff   :  { %v2877_v5 = vpop.xlane.xlu0 %2876 }
0x1900   :  { %5735 = vpow2.f32 %v2712_v4  ;;  %v2878_v6 = vsub.f32 %v2874_v58, %v2877_v5 }
0x1902   :  { %v2879_v39 = vmul.f32 1.442695, %v2878_v6 }
0x1903   :  { %v2887_v14 = vpop.permute.xlu0 %2886 }
0x1904   :  { %5737 = vpow2.f32 %v2879_v39 }
0x190d   :  { %v5736_v63 = vpop.eup %5735 }
0x190e   :  { %v2714_v7 = vsel %vm330_vm3, %v5736_v63, 0.0 }
0x190f   :  { %2715 = vadd.xlane.f32.xlu1 %v2714_v7 }
0x1911   :  { %v5738_v52 = vpop.eup %5737 }
0x1912   :  { %v2881_v8 = vsel %vm330_vm3, %v5738_v52, 0.0 }
0x1913   :  { %2882 = vadd.xlane.f32.xlu1 %v2881_v8 }
0x1924   :  { %2719 = vrot.lane.b32.xlu1 %v6419_v27, %s5814_s23 }
0x1928   :  { %3110 = vrot.lane.b32.xlu1 %v6419_v27, %s5815_s1 }
0x192c   :  { %3108 = vrot.lane.b32.xlu1 %v6419_v27, %s5816_s5 }
0x1998   :  { %v2716_v9 = vpop.xlane.xlu1 %2715 }
0x1999   :  { %5739 = vrcp.f32 %v2716_v9 }
0x199c   :  { %v2883_v10 = vpop.xlane.xlu1 %2882 }
0x199d   :  { %5741 = vrcp.f32 %v2883_v10 }
0x19a0   :  { %v2720_v11 = vpop.permute.xlu1 %2719 }
0x19a1   :  { %5500 = vmatpush3.msra.mxu0 %v2720_v11 }
0x19a2   :  { %5509 = vmatprep.subr.mxu0 %v5809_v41 }
0x19a4   :  { %v3111_v25 = vpop.permute.xlu1 %3110 }
0x19a6   :  { %v5740_v45 = vpop.eup %5739 }
0x19a7   :  { %v2718_v13 = vmul.f32 %v5740_v45, %v5736_v63 }
0x19a9   :  { %5502 = vmatmul.mubr.msk.f32.vlgmr.msra.gmra.mxu0 %vm330_vm3, %v2718_v13 }
0x19aa   :  { %v5742_v15 = vpop.eup %5741  ;;  %5510 = vmatpush3.msra.mxu0 %v2887_v14  ;;  %5511 = vmatprep.mubr.msk.f32.mxu0 %vm5810_vm2, %v5809_v41 }
0x19ab   :  { %v2885_v17 = vmul.f32 %v5742_v15, %v5738_v52  ;;  %5519 = vmatprep.subr.mxu0 %v5809_v41 }
0x19ad   :  { %5512 = vmatmul.mubr.msk.f32.vlgmr.msra.gmra.mxu0 %vm330_vm3, %v2885_v17 }
0x19ae   :  { %5520 = vmatpush3.msra.mxu0 %v6071_v19  ;;  %5521 = vmatprep.mubr.msk.f32.mxu0 %vm5810_vm2, %v5809_v41  ;;  %v3109_v19 = vpop.permute.xlu1 %3108 }
0x19af   :  { %5529 = vmatprep.subr.mxu0 %v5809_v41 }
0x1a69   :  { %v2791_v21 = vpop.f32.mrf.mxu0 }
0x1a6a   :  { %5522 = vmatmul.mubr.msk.f32.vlgmr.msra.gmra.mxu0 %vm330_vm3, %v2791_v21 }
0x1a6b   :  { %v5503_v29 = vpop.f32.mrf.mxu0  ;;  %5531 = vmatprep.mubr.msk.f32.mxu0 %vm5810_vm2, %v5809_v41 }
0x1a6d   :  { %v2958_v30 = vpop.f32.mrf.mxu0 }
0x1a6e   :  { %5517 = vmatmul.mubr.msk.f32.vlgmr.msra.gmra.mxu1 %vm330_vm3, %v2958_v30 }
0x1a6f   :  { %5525 = vmatpush3.xpose.msk.msra.mxu1 %vm330_vm3, %v3111_v25  ;;  %v5513_v43 = vpop.f32.mrf.mxu0  ;;  %5526 = vmatprep.mubr.msk.f32.mxu1 %vm5810_vm2, %v5809_v41 }
0x1a70   :  { %5534 = vmatprep.subr.mxu1 %v5809_v41 }
0x1a72   :  { %5527 = vmatmul.mubr.msk.f32.vlgmr.msra.gmra.mxu1 %vm330_vm3, %v3109_v19 }
0x1a73   :  { %5535 = vmatpush3.msra.mxu1 %v6122_v61  ;;  %5536 = vmatprep.mubr.msk.f32.mxu1 %vm5810_vm2, %v5809_v41 }
0x1a74   :  { %5544 = vmatprep.subr.mxu1 %v5809_v41 }
0x1b2a   :  { %v3104_v31 = vpop.f32.mrf.mxu0 }
0x1b2c   :  { %v5523_v32 = vpop.f32.mrf.mxu0 }
0x1b2e   :  { %v3031_v36 = vpop.f32.mrf.mxu1 }
0x1b2f   :  { %v3105_v37 = vadd.f32 %v3104_v31, %v3031_v36 }
0x1b30   :  { %v5518_v44 = vpop.f32.mrf.mxu1 }
0x1b32   :  { %v3182_v56 = vpop.f32.mrf.mxu1 }
0x1b33   :  { %v3186_v57 = vmul.f32 0.35355338, %v3182_v56 }
0x1b34   :  { %v5528_v42 = vpop.f32.mrf.mxu1 }
0x1b35   :  { %v3187_v58 = vadd.f32 %v3186_v57, %v6044_v53  ;;  %v5782_v57 = vld [vmem:[%s6731_s8 + $0x8] sm:$0xff] }
0x1b37   :  { %v3188_v20 = vsel %vm330_vm3, %v3187_v58, -inf }
0x1b38   :  { %3189 = vmax.xlane.f32.xlu1 %v3188_v20 }
0x1b49   :  { %3199 = vrot.lane.b32.xlu1 %v6419_v27, %s5820_s4 }
0x1b4d   :  { %3349 = vrot.lane.b32.xlu1 %v6419_v27, %s5819_s30 }
0x1bc1   :  { %v3190_v61 = vpop.xlane.xlu1 %3189 }
0x1bc2   :  { %v3191_v59 = vsub.f32 %v3187_v58, %v3190_v61 }
0x1bc4   :  { %v3192_v62 = vmul.f32 1.442695, %v3191_v59 }
0x1bc5   :  { %v3200_v4 = vpop.permute.xlu1 %3199 }
0x1bc6   :  { %5743 = vpow2.f32 %v3192_v62  ;;  %5530 = vmatpush3.msra.mxu0 %v3200_v4 }
0x1bc7   :  { %5539 = vmatprep.subr.mxu0 %v5809_v41 }
0x1bc9   :  { %v3350_v8 = vpop.permute.xlu1 %3349 }
0x1bd3   :  { %v5744_v5 = vpop.eup %5743 }
0x1bd4   :  { %v3194_v6 = vsel %vm330_vm3, %v5744_v5, 0.0 }
0x1bd5   :  { %3195 = vadd.xlane.f32.xlu0 %v3194_v6 }
0x1beb   :  { %3351 = vrot.lane.b32.xlu0 %v6419_v27, %s6767_s16 }
0x1c5e   :  { %v3196_v39 = vpop.xlane.xlu0 %3195 }
0x1c5f   :  { %5745 = vrcp.f32 %v3196_v39 }
0x1c62   :  { %v3352_v52 = vpop.permute.xlu0 %3351 }
0x1c6c   :  { %v5746_v63 = vpop.eup %5745 }
0x1c6d   :  { %v3198_v7 = vmul.f32 %v5746_v63, %v5744_v5 }
0x1c6f   :  { %5532 = vmatmul.mubr.msk.f32.vlgmr.msra.gmra.mxu0 %vm330_vm3, %v3198_v7 }
0x1c70   :  { %5540 = vmatpush3.xpose.msk.msra.mxu0 %vm330_vm3, %v3352_v52  ;;  %5541 = vmatprep.mubr.msk.f32.mxu0 %vm5810_vm2, %v5809_v41 }
0x1c71   :  { %5549 = vmatprep.subr.mxu0 %v5809_v41 }
0x1c73   :  { %5542 = vmatmul.mubr.msk.f32.vlgmr.msra.gmra.mxu0 %vm330_vm3, %v3350_v8 }
0x1c74   :  { %5550 = vmatpush3.msra.mxu0 %v6159_v22  ;;  %5551 = vmatprep.mubr.msk.f32.mxu0 %vm5810_vm2, %v5809_v41  ;;  %v5781_v22 = vld [vmem:[%s6730_s7] ss:$0 sm:$0xff] }
0x1c75   :  { %5559 = vmatprep.subr.mxu0 %v5809_v41  ;;  %v6506_v17 = vadd.f32 %v5781_v22, %v6416_v24 }
0x1d2f   :  { %v3271_v9 = vpop.f32.mrf.mxu0 }
0x1d30   :  { %5537 = vmatmul.mubr.msk.f32.vlgmr.msra.gmra.mxu1 %vm330_vm3, %v3271_v9 }
0x1d31   :  { %v5533_v10 = vpop.f32.mrf.mxu0  ;;  %5546 = vmatprep.mubr.msk.f32.mxu1 %vm5810_vm2, %v5809_v41 }
0x1d33   :  { %v3423_v11 = vpop.f32.mrf.mxu0 }
0x1d34   :  { %v3427_v45 = vmul.f32 0.35355338, %v3423_v11 }
0x1d35   :  { %v5543_v13 = vpop.f32.mrf.mxu0 }
0x1d36   :  { %v3428_v14 = vadd.f32 %v3427_v45, %v6044_v53 }
0x1d38   :  { %v3429_v15 = vsel %vm330_vm3, %v3428_v14, -inf }
0x1d39   :  { %3430 = vmax.xlane.f32.xlu1 %v3429_v15 }
0x1d4a   :  { %3591 = vrot.lane.b32.xlu1 %v6506_v17, %s5812_s28 }
0x1d4e   :  { %3758 = vrot.lane.b32.xlu1 %v6506_v17, %s5811_s3 }
0x1dc2   :  { %v3431_v21 = vpop.xlane.xlu1 %3430 }
0x1dc3   :  { %v3432_v25 = vsub.f32 %v3428_v14, %v3431_v21 }
0x1dc5   :  { %v3433_v29 = vmul.f32 1.442695, %v3432_v25 }
0x1dc6   :  { %v3592_v44 = vpop.permute.xlu1 %3591 }
0x1dc7   :  { %5747 = vpow2.f32 %v3433_v29 }
0x1dd4   :  { %v5748_v53 = vpop.eup %5747 }
0x1dd5   :  { %v3435_v30 = vsel %vm330_vm3, %v5748_v53, 0.0 }
0x1dd6   :  { %3436 = vadd.xlane.f32.xlu0 %v3435_v30 }
0x1dec   :  { %3440 = vrot.lane.b32.xlu0 %v6419_v27, %s6768_s11  ;;  %v3759_v27 = vpop.permute.xlu1 %3758 }
0x1df0   :  { %3756 = vrot.lane.b32.xlu0 %v6506_v17, %s5813_s29  ;;  %v3344_v24 = vpop.f32.mrf.mxu1 }
0x1df1   :  { %v3348_v43 = vadd.f32 %v3344_v24, %v3105_v37 }
0x1df2   :  { %v5538_v19 = vpop.f32.mrf.mxu1 }
0x1e5f   :  { %v3437_v31 = vpop.xlane.xlu0 %3436 }
0x1e60   :  { %5749 = vrcp.f32 %v3437_v31 }
0x1e63   :  { %v3441_v32 = vpop.permute.xlu0 %3440 }
0x1e64   :  { %5545 = vmatpush3.msra.mxu1 %v3441_v32 }
0x1e65   :  { %5554 = vmatprep.subr.mxu1 %v5809_v41 }
0x1e67   :  { %v3757_v37 = vpop.permute.xlu0 %3756 }
0x1e6d   :  { %v5750_v36 = vpop.eup %5749 }
0x1e6e   :  { %v3439_v56 = vmul.f32 %v5750_v36, %v5748_v53 }
0x1e70   :  { %5547 = vmatmul.mubr.msk.f32.vlgmr.msra.gmra.mxu1 %vm330_vm3, %v3439_v56 }
0x1e71   :  { %5555 = vmatpush3.xpose.msk.msra.mxu1 %vm330_vm3, %v3592_v44  ;;  %5556 = vmatprep.mubr.msk.f32.mxu1 %vm5810_vm2, %v5809_v41  ;;  %v5783_v44 = vld [vmem:[%s6731_s8] sm:$0xff] }
0x1e72   :  { %5564 = vmatprep.subr.mxu1 %v5809_v41 }
0x1e74   :  { %5557 = vmatmul.mubr.msk.f32.vlgmr.msra.gmra.mxu1 %vm330_vm3, %v6506_v17 }
0x1e75   :  { %5565 = vmatpush3.xpose.msk.msra.mxu1 %vm330_vm3, %v3759_v27  ;;  %5566 = vmatprep.mubr.msk.f32.mxu1 %vm5810_vm2, %v5809_v41 }
0x1e76   :  { %5574 = vmatprep.subr.mxu1 %v5809_v41 }
0x1e78   :  { %5567 = vmatmul.mubr.msk.f32.vlgmr.msra.gmra.mxu1 %vm330_vm3, %v3757_v37 }
0x1e79   :  { %5575 = vmatpush3.msra.mxu1 %v5782_v57  ;;  %5576 = vmatprep.mubr.msk.f32.mxu1 %vm5810_vm2, %v5809_v41 }
0x1e7a   :  { %5584 = vmatprep.subr.mxu1 %v5809_v41 }
0x1f30   :  { %v3512_v42 = vpop.f32.mrf.mxu1 }
0x1f31   :  { %5552 = vmatmul.mubr.msk.f32.vlgmr.msra.gmra.mxu0 %vm330_vm3, %v3512_v42 }
0x1f32   :  { %v5548_v58 = vpop.f32.mrf.mxu1  ;;  %5561 = vmatprep.mubr.msk.f32.mxu0 %vm5810_vm2, %v5809_v41 }
0x1f34   :  { %v3663_v20 = vpop.f32.mrf.mxu1 }
0x1f35   :  { %v3667_v61 = vmul.f32 0.35355338, %v3663_v20  ;;  %v5784_v20 = vld [vmem:[%s6731_s8 + $0x10] sm:$0xff] }
0x1f36   :  { %v5558_v59 = vpop.f32.mrf.mxu1 }
0x1f37   :  { %v3668_v62 = vadd.f32 %v3667_v61, %v6168_v26 }
0x1f38   :  { %v3830_v4 = vpop.f32.mrf.mxu1 }
0x1f39   :  { %v3834_v5 = vmul.f32 0.35355338, %v3830_v4  ;;  %v3669_v6 = vsel %vm330_vm3, %v3668_v62, -inf }
0x1f3a   :  { %3670 = vmax.xlane.f32.xlu1 %v3669_v6  ;;  %v5568_v39 = vpop.f32.mrf.mxu1 }
0x1f3b   :  { %v3835_v63 = vadd.f32 %v3834_v5, %v6168_v26 }
0x1f3d   :  { %v3836_v7 = vsel %vm330_vm3, %v3835_v63, -inf }
0x1f3e   :  { %3837 = vmax.xlane.f32.xlu0 %v3836_v7 }
0x1fc3   :  { %v3671_v52 = vpop.xlane.xlu1 %3670 }
0x1fc4   :  { %v3672_v8 = vsub.f32 %v3668_v62, %v3671_v52 }
0x1fc6   :  { %v3673_v9 = vmul.f32 1.442695, %v3672_v8 }
0x1fc7   :  { %v3838_v10 = vpop.xlane.xlu0 %3837 }
0x1fc8   :  { %5751 = vpow2.f32 %v3673_v9  ;;  %v3839_v11 = vsub.f32 %v3835_v63, %v3838_v10 }
0x1fca   :  { %v3840_v45 = vmul.f32 1.442695, %v3839_v11 }
0x1fcc   :  { %5753 = vpow2.f32 %v3840_v45 }
0x1fd5   :  { %v5752_v13 = vpop.eup %5751 }
0x1fd6   :  { %v3675_v14 = vsel %vm330_vm3, %v5752_v13, 0.0 }
0x1fd7   :  { %3676 = vadd.xlane.f32.xlu0 %v3675_v14 }
0x1fd9   :  { %v5754_v15 = vpop.eup %5753 }
0x1fda   :  { %v3842_v22 = vsel %vm330_vm3, %v5754_v15, 0.0 }
0x1fdb   :  { %3843 = vadd.xlane.f32.xlu1 %v3842_v22 }
0x1fec   :  { %3847 = vrot.lane.b32.xlu1 %v6506_v17, %s5817_s24 }
0x1fed   :  { %3680 = vrot.lane.b32.xlu0 %v6506_v17, %s5814_s23 }
0x1ff0   :  { %4071 = vrot.lane.b32.xlu1 %v6506_v17, %s5815_s1 }
0x1ff1   :  { %v3585_v21 = vpop.f32.mrf.mxu0  ;;  %4069 = vrot.lane.b32.xlu0 %v6506_v17, %s5816_s5 }
0x1ff2   :  { %v6553_v25 = vadd.f32 %v3585_v21, %v3348_v43 }
0x1ff3   :  { %v5553_v29 = vpop.f32.mrf.mxu0 }
0x2060   :  { %v3677_v53 = vpop.xlane.xlu0 %3676 }
0x2061   :  { %5755 = vrcp.f32 %v3677_v53  ;;  %v5785_v53 = vld [vmem:[%s6731_s8 + $0x18] sm:$0xff] }
0x2064   :  { %v3844_v30 = vpop.xlane.xlu1 %3843  ;;  %v3681_v24 = vpop.permute.xlu0 %3680 }
0x2065   :  { %5757 = vrcp.f32 %v3844_v30  ;;  %5560 = vmatpush3.msra.mxu0 %v3681_v24 }
0x2066   :  { %5569 = vmatprep.subr.mxu0 %v5809_v41 }
0x2068   :  { %v3848_v32 = vpop.permute.xlu1 %3847  ;;  %v4070_v58 = vpop.permute.xlu0 %4069 }
0x206c   :  { %v4072_v57 = vpop.permute.xlu1 %4071 }
0x206e   :  { %v5756_v19 = vpop.eup %5755 }
0x206f   :  { %v3679_v31 = vmul.f32 %v5756_v19, %v5752_v13 }
0x2071   :  { %5562 = vmatmul.mubr.msk.f32.vlgmr.msra.gmra.mxu0 %vm330_vm3, %v3679_v31 }
0x2072   :  { %v5758_v36 = vpop.eup %5757  ;;  %5570 = vmatpush3.msra.mxu0 %v3848_v32  ;;  %5571 = vmatprep.mubr.msk.f32.mxu0 %vm5810_vm2, %v5809_v41 }
0x2073   :  { %v3846_v43 = vmul.f32 %v5758_v36, %v5754_v15  ;;  %5579 = vmatprep.subr.mxu0 %v5809_v41 }
0x2075   :  { %5572 = vmatmul.mubr.msk.f32.vlgmr.msra.gmra.mxu0 %vm330_vm3, %v3846_v43 }
0x2076   :  { %5580 = vmatpush3.msra.mxu0 %v5783_v44  ;;  %5581 = vmatprep.mubr.msk.f32.mxu0 %vm5810_vm2, %v5809_v41 }
0x2077   :  { %5589 = vmatprep.subr.mxu0 %v5809_v41 }
0x2131   :  { %v3752_v56 = vpop.f32.mrf.mxu0 }
0x2132   :  { %5582 = vmatmul.mubr.msk.f32.vlgmr.msra.gmra.mxu0 %vm330_vm3, %v3752_v56 }
0x2133   :  { %v5563_v27 = vpop.f32.mrf.mxu0  ;;  %5591 = vmatprep.mubr.msk.f32.mxu0 %vm5810_vm2, %v5809_v41 }
0x2135   :  { %v3919_v37 = vpop.f32.mrf.mxu0 }
0x2136   :  { %5577 = vmatmul.mubr.msk.f32.vlgmr.msra.gmra.mxu1 %vm330_vm3, %v3919_v37 }
0x2137   :  { %5585 = vmatpush3.xpose.msk.msra.mxu1 %vm330_vm3, %v4072_v57  ;;  %v5573_v42 = vpop.f32.mrf.mxu0  ;;  %5586 = vmatprep.mubr.msk.f32.mxu1 %vm5810_vm2, %v5809_v41  ;;  %v4551_v57 = vadd.f32 %v6232_v48, %v6553_v25 }
0x2138   :  { %5594 = vmatprep.subr.mxu1 %v5809_v41 }
0x213a   :  { %5587 = vmatmul.mubr.msk.f32.vlgmr.msra.gmra.mxu1 %vm330_vm3, %v4070_v58  ;;  %v4553_v58 = vadd.f32 %v4551_v57, %v6404_v18 }
0x213b   :  { %5595 = vmatpush3.msra.mxu1 %v5784_v20  ;;  %5596 = vmatprep.mubr.msk.f32.mxu1 %vm5810_vm2, %v5809_v41 }
0x213c   :  { %5604 = vmatprep.subr.mxu1 %v5809_v41  ;;  %v4555_v20 = vsel %vm245_vm1, %v4553_v58, 0.0 }
0x21f2   :  { %v4065_v61 = vpop.f32.mrf.mxu0 }
0x21f4   :  { %v5583_v59 = vpop.f32.mrf.mxu0 }
0x21f6   :  { %v3992_v62 = vpop.f32.mrf.mxu1 }
0x21f7   :  { %v4066_v4 = vadd.f32 %v4065_v61, %v3992_v62 }
0x21f8   :  { %v5578_v5 = vpop.f32.mrf.mxu1 }
0x21fa   :  { %v4143_v6 = vpop.f32.mrf.mxu1 }
0x21fb   :  { %v4147_v39 = vmul.f32 0.35355338, %v4143_v6 }
0x21fc   :  { %v5588_v63 = vpop.f32.mrf.mxu1 }
0x21fd   :  { %v4148_v7 = vadd.f32 %v4147_v39, %v6168_v26 }
0x21ff   :  { %v4149_v52 = vsel %vm330_vm3, %v4148_v7, -inf }
0x2200   :  { %4150 = vmax.xlane.f32.xlu1 %v4149_v52 }
0x2211   :  { %4312 = vrot.lane.b32.xlu1 %v6506_v17, %s6767_s16 }
0x2215   :  { %4310 = vrot.lane.b32.xlu1 %v6506_v17, %s5819_s30 }
0x2289   :  { %v4151_v8 = vpop.xlane.xlu1 %4150 }
0x228a   :  { %v4152_v9 = vsub.f32 %v4148_v7, %v4151_v8 }
0x228c   :  { %v4153_v10 = vmul.f32 1.442695, %v4152_v9 }
0x228d   :  { %v4313_v22 = vpop.permute.xlu1 %4312 }
0x228e   :  { %5759 = vpow2.f32 %v4153_v10 }
0x2291   :  { %v4311_v29 = vpop.permute.xlu1 %4310 }
0x229b   :  { %v5760_v11 = vpop.eup %5759 }
0x229c   :  { %v4155_v45 = vsel %vm330_vm3, %v5760_v11, 0.0 }
0x229d   :  { %4156 = vadd.xlane.f32.xlu0 %v4155_v45 }
0x22b3   :  { %4160 = vrot.lane.b32.xlu0 %v6506_v17, %s5820_s4 }
0x2326   :  { %v4157_v13 = vpop.xlane.xlu0 %4156 }
0x2327   :  { %5761 = vrcp.f32 %v4157_v13 }
0x232a   :  { %v4161_v14 = vpop.permute.xlu0 %4160 }
0x232b   :  { %5590 = vmatpush3.msra.mxu0 %v4161_v14 }
0x232c   :  { %5599 = vmatprep.subr.mxu0 %v5809_v41 }
0x2334   :  { %v5762_v15 = vpop.eup %5761 }
0x2335   :  { %v4159_v21 = vmul.f32 %v5762_v15, %v5760_v11 }
0x2337   :  { %5592 = vmatmul.mubr.msk.f32.vlgmr.msra.gmra.mxu0 %vm330_vm3, %v4159_v21 }
0x2338   :  { %5600 = vmatpush3.xpose.msk.msra.mxu0 %vm330_vm3, %v4313_v22  ;;  %5601 = vmatprep.mubr.msk.f32.mxu0 %vm5810_vm2, %v5809_v41 }
0x2339   :  { %5609 = vmatprep.subr.mxu0 %v5809_v41 }
0x233b   :  { %5602 = vmatmul.mubr.msk.f32.vlgmr.msra.gmra.mxu0 %vm330_vm3, %v4311_v29 }
0x233c   :  { %5610 = vmatpush3.msra.mxu0 %v5785_v53  ;;  %5611 = vmatprep.mubr.msk.f32.mxu0 %vm5810_vm2, %v5809_v41 }
0x233d   :  { %5625 = vmatprep.subr.mxu0 %v6314_v0 }
0x23f7   :  { %v4232_v30 = vpop.f32.mrf.mxu0 }
0x23f8   :  { %5597 = vmatmul.mubr.msk.f32.vlgmr.msra.gmra.mxu1 %vm330_vm3, %v4232_v30 }
0x23f9   :  { %v5593_v24 = vpop.f32.mrf.mxu0  ;;  %5606 = vmatprep.mubr.msk.f32.mxu1 %vm5810_vm2, %v5809_v41 }
0x23fb   :  { %v4384_v19 = vpop.f32.mrf.mxu0 }
0x23fc   :  { %v4388_v31 = vmul.f32 0.35355338, %v4384_v19 }
0x23fd   :  { %v5603_v32 = vpop.f32.mrf.mxu0 }
0x23fe   :  { %v4389_v36 = vadd.f32 %v4388_v31, %v6168_v26 }
0x2400   :  { %v4390_v43 = vsel %vm330_vm3, %v4389_v36, -inf }
0x2401   :  { %4391 = vmax.xlane.f32.xlu0 %v4390_v43 }
0x2417   :  { %4401 = vrot.lane.b32.xlu0 %v6506_v17, %s6768_s11 }
0x248a   :  { %v4392_v44 = vpop.xlane.xlu0 %4391 }
0x248b   :  { %v4393_v56 = vsub.f32 %v4389_v36, %v4392_v44 }
0x248d   :  { %v4394_v27 = vmul.f32 1.442695, %v4393_v56 }
0x248e   :  { %v4402_v37 = vpop.permute.xlu0 %4401 }
0x248f   :  { %5763 = vpow2.f32 %v4394_v27  ;;  %5605 = vmatpush3.msra.mxu1 %v4402_v37 }
0x2490   :  { %5614 = vmatprep.subr.mxu1 %v6271_v47 }
0x249c   :  { %v5764_v42 = vpop.eup %5763 }
0x249d   :  { %v4396_v26 = vsel %vm330_vm3, %v5764_v42, 0.0 }
0x249e   :  { %4397 = vadd.xlane.f32.xlu1 %v4396_v26 }
0x24a2   :  { %4556 = vadd.xlane.f32.xlu1 %v4555_v20 }
0x24b8   :  { %v4305_v17 = vpop.f32.mrf.mxu1 }
0x24b9   :  { %v4309_v61 = vadd.f32 %v4305_v17, %v4066_v4 }
0x24ba   :  { %v5598_v59 = vpop.f32.mrf.mxu1 }
0x2527   :  { %v4398_v62 = vpop.xlane.xlu1 %4397 }
0x2528   :  { %5765 = vrcp.f32 %v4398_v62 }
0x2535   :  { %v5766_v5 = vpop.eup %5765 }
0x2536   :  { %v4400_v6 = vmul.f32 %v5766_v5, %v5764_v42 }
0x2538   :  { %5607 = vmatmul.mubr.msk.f32.vlgmr.msra.gmra.mxu1 %vm330_vm3, %v4400_v6 }
0x2539   :  { %5615 = vmatpush3.msra.mxu1 %v6271_v47  ;;  %v4557_v47 = vpop.xlane.xlu1 %4556 }
0x253a   :  { %5616 = vmatprep.subr.mxu1 %v6278_v51 }
0x253b   :  { %5617 = vmatpush3.msra.mxu1 %v6278_v51  ;;  %v4561_v51 = vmul.f32 0.03125, %v4557_v47 }
0x253c   :  { %5618 = vmatprep.subr.mxu1 %v6283_v54 }
0x253d   :  { %5619 = vmatpush3.msra.mxu1 %v6283_v54 }
0x253e   :  { %5620 = vmatprep.subr.mxu1 %v6290_v55 }
0x253f   :  { %5621 = vmatpush3.msra.mxu1 %v6290_v55 }
0x2540   :  { %5644 = vmatprep.subr.mxu1 %v5809_v41 }
0x25f8   :  { %v4473_v48 = vpop.f32.mrf.mxu1 }
0x25f9   :  { %5612 = vmatmul.mubr.msk.f32.vlgmr.msra.gmra.mxu0 %vm330_vm3, %v4473_v48 }
0x25fa   :  { %v5608_v18 = vpop.f32.mrf.mxu1  ;;  %5626 = vmatpush3.msra.mxu0 %v6314_v0 }
0x25fb   :  { %5627 = vmatprep.subr.mxu0 %v6319_v16 }
0x25fc   :  { %5628 = vmatpush3.msra.mxu0 %v6319_v16  ;;  %v4563_v16 = vsub.f32 %v4553_v58, %v4561_v51 }
0x25fd   :  { %5629 = vmatprep.subr.mxu0 %v6326_v33 }
0x25fe   :  { %5630 = vmatpush3.msra.mxu0 %v6326_v33  ;;  %v5786_v33 = vld [vmem:[%s6732_s9] ss:$0 sm:$0xff] }
0x25ff   :  { %5631 = vmatprep.subr.mxu0 %v6333_v34 }
0x2600   :  { %5632 = vmatpush3.msra.mxu0 %v6333_v34 }
0x2601   :  { %5633 = vmatprep.subr.mxu0 %v6340_v35 }
0x2602   :  { %5634 = vmatpush3.msra.mxu0 %v6340_v35 }
0x2603   :  { %5635 = vmatprep.subr.mxu0 %v6347_v1 }
0x2604   :  { %5636 = vmatpush3.msra.mxu0 %v6347_v1 }
0x2605   :  { %5637 = vmatprep.subr.mxu0 %v6354_v2 }
0x2606   :  { %5638 = vmatpush3.msra.mxu0 %v6354_v2  ;;  %v4565_v2 = vmul.f32 %v4563_v16, %v4563_v16 }
0x2607   :  { %5639 = vmatprep.subr.mxu0 %v6361_v3 }
0x2608   :  { %5640 = vmatpush3.msra.mxu0 %v6361_v3  ;;  %v4567_v3 = vsel %vm245_vm1, %v4565_v2, 0.0 }
0x2609   :  { %5662 = vmatprep.subr.mxu0 %v5809_v41 }
0x26b9   :  { %v4546_v54 = vpop.f32.mrf.mxu0 }
0x26ba   :  { %v4550_v55 = vadd.f32 %v4546_v54, %v4309_v61 }
0x26bb   :  { %v5613_v0 = vpop.f32.mrf.mxu0 }
0x26bc   :  { %v4552_v34 = vadd.f32 %v5786_v33, %v4550_v55 }
0x26be   :  { %v4554_v35 = vadd.f32 %v4552_v34, %v6410_v23 }
0x26c0   :  { %v4558_v1 = vsel %vm245_vm1, %v4554_v35, 0.0 }
0x26c1   :  { %4559 = vadd.xlane.f32.xlu1 %v4558_v1 }
0x26c5   :  { %4568 = vadd.xlane.f32.xlu1 %v4567_v3 }
0x274a   :  { %v4560_v25 = vpop.xlane.xlu1 %4559 }
0x274b   :  { %v4562_v4 = vmul.f32 0.03125, %v4560_v25 }
0x274d   :  { %v4564_v39 = vsub.f32 %v4554_v35, %v4562_v4 }
0x274e   :  { %v4569_v63 = vpop.xlane.xlu1 %4568 }
0x274f   :  { %v4573_v7 = vmul.f32 0.03125, %v4569_v63  ;;  %v4566_v52 = vmul.f32 %v4564_v39, %v4564_v39 }
0x2751   :  { %v4575_v8 = vadd.f32 1e-12, %v4573_v7  ;;  %v4570_v9 = vsel %vm245_vm1, %v4566_v52, 0.0 }
0x2752   :  { %4571 = vadd.xlane.f32.xlu1 %v4570_v9 }
0x2753   :  { %5767 = vrsqrt.f32 %v4575_v8 }
0x2760   :  { %v5768_v10 = vpop.eup %5767 }
0x2761   :  { %v4579_v23 = vmul.f32 %v5768_v10, %v4563_v16  ;;  %v4798_v10 = vand.u32 127, %v406_v49  ;;  %v4881_v49 = vld [vmem:[%s6741_s18 + $0x18] sm:$0xff] }
0x2763   :  { %v4581_v11 = vmul.f32 %v6255_v40, %v4579_v23  ;;  %v4801_v23 = vmul.u32 8, %v6035_v50  ;;  %v4880_v50 = vld [vmem:[%s6741_s18 + $0x10] sm:$0xff] }
0x2765   :  { %v4583_v45 = vadd.f32 %v6260_v38, %v4581_v11  ;;  %vm4802_vm5 = vcmp.eq.s32.totalorder %v4798_v10, %v4801_v23 }
0x2767   :  { %5622 = vmatprep.mubr.msk.f32.mxu1 %vm245_vm1, %v4583_v45 }
0x27db   :  { %v4572_v13 = vpop.xlane.xlu1 %4571 }
0x27dc   :  { %v4574_v14 = vmul.f32 0.03125, %v4572_v13 }
0x27de   :  { %v4576_v15 = vadd.f32 1e-12, %v4574_v14 }
0x27e0   :  { %5769 = vrsqrt.f32 %v4576_v15 }
0x27ed   :  { %v5770_v22 = vpop.eup %5769 }
0x27ee   :  { %v4580_v21 = vmul.f32 %v5770_v22, %v4564_v39 }
0x27f0   :  { %v4582_v29 = vmul.f32 %v6255_v40, %v4580_v21  ;;  %v5152_v21 = vsel %vm4802_vm5, 1.0, %v5809_v41 }
0x27f2   :  { %v4584_v53 = vadd.f32 %v6260_v38, %v4582_v29 }
0x27f4   :  { %5623 = vmatmul.mubr.msk.f32.vlgmr.msra.gmra.mxu1 %vm245_vm1, %v4584_v53 }
0x27f5   :  { %5648 = vmatprep.mubr.msk.f32.mxu1 %vm5810_vm2, %v5809_v41 }
0x28b4   :  { %v5624_v30 = vpop.f32.mrf.mxu1 }
0x28b5   :  { %v4663_v24 = vadd.f32 %v5624_v30, %v6371_v60  ;;  %v4966_v30 = vld [vmem:[%s6743_s20 + $0x18] sm:$0xff] }
0x28b6   :  { %v4657_v19 = vpop.f32.mrf.mxu1 }
0x28b7   :  { %v4669_v31 = vmul.f32 0.044715, %v4663_v24  ;;  %v4658_v32 = vadd.f32 %v6371_v60, %v4657_v19  ;;  %v4667_v61 = vmul.f32 0.5, %v4663_v24  ;;  %v4964_v19 = vld [vmem:[%s6743_s20 + $0x8] sm:$0xff] }
0x28b9   :  { %v4671_v36 = vmul.f32 %v4669_v31, %v4663_v24  ;;  %v4668_v43 = vmul.f32 0.044715, %v4658_v32  ;;  %v4666_v20 = vmul.f32 0.5, %v4658_v32  ;;  %v4963_v31 = vld [vmem:[%s6743_s20] sm:$0xff] }
0x28bb   :  { %v4673_v44 = vmul.f32 %v4671_v36, %v4663_v24  ;;  %v4670_v56 = vmul.f32 %v4668_v43, %v4658_v32 }
0x28bd   :  { %v4675_v27 = vadd.f32 %v4673_v44, %v4663_v24  ;;  %v4672_v40 = vmul.f32 %v4670_v56, %v4658_v32  ;;  %v4965_v24 = vld [vmem:[%s6743_s20 + $0x10] sm:$0xff]  ;;  %s5822_s20 = smov [#allocation2]  }
0x28be   :  { %s5055_s29 = sshll.u32 %s5822_s20, 4  ;;  %s5056_s29 = int_to_ptr.vmem [resolvable:$true] %s5055_s29 }
0x28bf   :  { %v4677_v37 = vmul.f32 0.7978846, %v4675_v27  ;;  %v4674_v38 = vadd.f32 %v4672_v40, %v4658_v32  ;;  %v5154_v32 = vld [vmem:[%s6742_s19] ss:$0 sm:$0xff]  ;;  %s5787_s19 = scalar_lea.vmem %s5056_s29, 32  ;;  %p5792_p1 = scmp.lt.s32.totalorder %s5056_s29, %s5056_s29 }
0x28c0   :  { %v5156_v27 = vld [vmem:[%s6744_s21] ss:$0 sm:$0xff]  ;;  %p5788_p0 = scmp.ne.s32.totalorder %s5056_s29, %s5787_s19  ;;  %p5793_p2 = scmp.lt.s32.totalorder %s5787_s19, %s5787_s19 }
0x28c1   :  { %5771 = vtanh.f32 %v4677_v37  ;;  %v4676_v57 = vmul.f32 0.7978846, %v4674_v38 }
0x28c2   :  { %p5794_p3 = por %p5793_p2, %p5792_p1 }
0x28c3   :  { %5773 = vtanh.f32 %v4676_v57 }
0x28c4   :  { %p5795_p4 = pnand %p5794_p3, %p5788_p0 }
0x28ce   :  { %v5772_v42 = vpop.eup %5771 }
0x28cf   :  { %v4681_v58 = vadd.f32 1.0, %v5772_v42 }
0x28d0   :  { %v5774_v26 = vpop.eup %5773 }
0x28d1   :  { %v4680_v17 = vadd.f32 1.0, %v5774_v26  ;;  %v4683_v62 = vmul.f32 %v4681_v58, %v4667_v61 }
0x28d3   :  { %v4682_v59 = vmul.f32 %v4680_v17, %v4666_v20 }
0x28d5   :  { %5641 = vmatprep.mubr.msk.f32.mxu0 %vm2422_vm4, %v4682_v59 }
0x28d6   :  { %5642 = vmatmul.mubr.msk.f32.vlgmr.msra.gmra.mxu0 %vm2422_vm4, %v4683_v62 }
0x28d7   :  { %5670 = vmatprep.mubr.msk.f32.mxu0 %vm5810_vm2, %v5809_v41  ;;  %5663 = vmatpush3.msra.mxu0 %v4966_v30 }
0x28d8   :  { %5664 = vmatprep.subr.mxu0 %v5809_v41 }
0x28d9   :  { %5665 = vmatpush3.msra.mxu0 %v4965_v24 }
0x28da   :  { %5666 = vmatprep.subr.mxu0 %v5809_v41 }
0x28db   :  { %5667 = vmatpush3.msra.mxu0 %v4964_v19 }
0x28dc   :  { %5668 = vmatprep.subr.mxu0 %v5809_v41 }
0x28dd   :  { %5669 = vmatpush3.msra.mxu0 %v4963_v31 }
0x2996   :  { %v5643_v60 = vpop.f32.mrf.mxu0 }
0x2997   :  { %v4762_v5 = vadd.f32 %v5643_v60, %v6382_v28 }
0x2998   :  { %v4756_v6 = vpop.f32.mrf.mxu0 }
0x2999   :  { %v4757_v48 = vadd.f32 %v6382_v28, %v4756_v6  ;;  %v4766_v18 = vadd.f32 %v4762_v5, %v4584_v53 }
0x299b   :  { %v4765_v47 = vadd.f32 %v4757_v48, %v4583_v45  ;;  %v4770_v51 = vsel %vm245_vm1, %v4766_v18, 0.0 }
0x299c   :  { %4771 = vadd.xlane.f32.xlu0 %v4770_v51 }
0x299d   :  { %v4767_v54 = vsel %vm245_vm1, %v4765_v47, 0.0 }
0x299e   :  { %4768 = vadd.xlane.f32.xlu1 %v4767_v54 }
0x2a25   :  { %v4772_v55 = vpop.xlane.xlu0 %4771 }
0x2a26   :  { %v4774_v0 = vmul.f32 0.03125, %v4772_v55 }
0x2a27   :  { %v4769_v16 = vpop.xlane.xlu1 %4768 }
0x2a28   :  { %v4776_v33 = vsub.f32 %v4766_v18, %v4774_v0  ;;  %v4773_v34 = vmul.f32 0.03125, %v4769_v16 }
0x2a2a   :  { %v4775_v35 = vsub.f32 %v4765_v47, %v4773_v34  ;;  %v4778_v1 = vmul.f32 %v4776_v33, %v4776_v33 }
0x2a2c   :  { %v4782_v2 = vsel %vm245_vm1, %v4778_v1, 0.0  ;;  %v4777_v3 = vmul.f32 %v4775_v35, %v4775_v35 }
0x2a2d   :  { %4783 = vadd.xlane.f32.xlu1 %v4782_v2 }
0x2a2e   :  { %v4779_v28 = vsel %vm245_vm1, %v4777_v3, 0.0 }
0x2a31   :  { %4780 = vadd.xlane.f32.xlu1 %v4779_v28 }
0x2ab6   :  { %v4784_v25 = vpop.xlane.xlu1 %4783 }
0x2ab7   :  { %v4786_v4 = vmul.f32 0.03125, %v4784_v25 }
0x2ab9   :  { %v4788_v39 = vadd.f32 1e-12, %v4786_v4 }
0x2aba   :  { %v4781_v63 = vpop.xlane.xlu1 %4780 }
0x2abb   :  { %5775 = vrsqrt.f32 %v4788_v39  ;;  %v4785_v7 = vmul.f32 0.03125, %v4781_v63 }
0x2abd   :  { %v4787_v52 = vadd.f32 1e-12, %v4785_v7 }
0x2abf   :  { %5777 = vrsqrt.f32 %v4787_v52 }
0x2ac8   :  { %v5776_v8 = vpop.eup %5775 }
0x2ac9   :  { %v4792_v9 = vmul.f32 %v5776_v8, %v4776_v33 }
0x2acb   :  { %v4794_v11 = vmul.f32 %v6395_v12, %v4792_v9 }
0x2acc   :  { %v5778_v45 = vpop.eup %5777 }
0x2acd   :  { %v4796_v13 = vadd.f32 %v6400_v46, %v4794_v11  ;;  %v4791_v14 = vmul.f32 %v5778_v45, %v4775_v35 }
0x2acf   :  { %5645 = vmatpush3.msra.mxu1 %v4796_v13  ;;  %v4793_v15 = vmul.f32 %v6395_v12, %v4791_v14  ;;  %v4879_v12 = vld [vmem:[%s6741_s18 + $0x8] sm:$0xff] }
0x2ad0   :  { %5646 = vmatprep.subr.mxu1 %v5809_v41 }
0x2ad1   :  { %v4795_v22 = vadd.f32 %v6400_v46, %v4793_v15  ;;  %v4878_v46 = vld [vmem:[%s6741_s18] sm:$0xff] }
0x2ad3   :  { %5647 = vmatpush3.msra.mxu1 %v4795_v22 }
0x2ad4   :  { %5649 = vmatmul.mubr.msk.f32.vlgmr.msra.gmra.mxu1 %vm76_vm0, %v5152_v21  ;;  %5651 = vmatprep.subr.mxu1 %v5809_v41 }
0x2ad5   :  { %5652 = vmatpush3.msra.mxu1 %v4881_v49  ;;  %5659 = vmatprep.mubr.msk.f32.mxu1 %vm5810_vm2, %v5809_v41 }
0x2ad6   :  { %5653 = vmatprep.subr.mxu1 %v5809_v41 }
0x2ad7   :  { %5654 = vmatpush3.msra.mxu1 %v4880_v50 }
0x2ad8   :  { %5655 = vmatprep.subr.mxu1 %v5809_v41 }
0x2ad9   :  { %5656 = vmatpush3.msra.mxu1 %v4879_v12 }
0x2ada   :  { %5657 = vmatprep.subr.mxu1 %v5809_v41 }
0x2adb   :  { %5658 = vmatpush3.msra.mxu1 %v4878_v46 }
0x2b94   :  { %v4874_v29 = vpop.f32.mrf.mxu1 }
0x2b95   :  { %5660 = vmatmul.mubr.msk.f32.vlgmr.msra.gmra.mxu1 %vm245_vm1, %v4874_v29 }
0x2b96   :  { %v5650_v53 = vpop.f32.mrf.mxu1 }
0x2c55   :  { %v4958_v36 = vpop.f32.mrf.mxu1 }
0x2c56   :  { %v4959_v43 = vadd.f32 %v5154_v32, %v4958_v36 }
0x2c57   :  { %v5661_v44 = vpop.f32.mrf.mxu1 }
0x2c58   :  { %5779 = vtanh.f32 %v4959_v43 }
0x2c65   :  { %v5780_v56 = vpop.eup %5779 }
0x2c66   :  { %5671 = vmatmul.mubr.msk.f32.vlgmr.msra.gmra.mxu0 %vm245_vm1, %v5780_v56 }
0x2d26   :  { %v5043_v40 = vpop.f32.mrf.mxu0 }
0x2d27   :  { %v5044_v41 = vadd.f32 %v5156_v27, %v5043_v40 }
0x2d28   :  { %v5672_v37 = vpop.f32.mrf.mxu0 }
0x2d29   :  { %5048 = vst.msk [vmem:[#allocation2] sm:$0x3] %vm5047_vm6, %v5044_v41 }
0x2d2a   :  { %5798 = shalt.err (!%p5795_p4)
}
0x2d2b   :  { %5058 = dma.vmem_to_hbm [thread:$0]  %s5056_s29, 32, %s6745_s22, [#allocation3]  }
0x2d2c   :  { %5807 = dma.done.wait [#allocation3], 32  }
0x2d2d   :  { %5808 = vsyncadd [#allocation3], 4294967264 }
0x2d2e   :  { %5062 = vsyncpa [#allocation3], 1 }

</bundles_post_ra>
